<compile_context>
chip_gen: v5e
topology: v5e:2x2
jax: 0.10.0
libtpu: 0.0.40
codegen_flags: <defaults>
</compile_context>

<pallas_src>
import functools

import numpy as np
import jax
import jax.numpy as jnp
from jax import lax
from jax.experimental import pallas as pl
from jax.experimental.pallas import tpu as pltpu

FILTER_SIZE = 11
SIGMA = 1.5
K1 = 0.01
K2 = 0.03


def _gauss_taps(size: int, sigma: float):
    """Static (Python-float) gaussian taps, same math as the PyTorch helper."""
    coords = np.arange(size, dtype=np.float64) - (size - 1) / 2.0
    g = -(coords ** 2) / (2.0 * sigma ** 2)
    e = np.exp(g - g.max())
    e = e / e.sum()
    return tuple(float(t) for t in e)


def _fspecial_gauss_1d(size: int, sigma: float) -> jnp.ndarray:
    """JAX version (used by the pure-JAX reference)."""
    coords = jnp.arange(size, dtype=jnp.float32) - (size - 1) / 2.0
    grid = -(coords ** 2) / (2.0 * sigma ** 2)
    return jax.nn.softmax(grid, axis=-1)


def _toeplitz_valid(n_in: int, n_out: int, taps) -> np.ndarray:
    """Banded Toeplitz T (n_in, n_out) with T[j+k, j] = taps[k] so that
    (x @ T)[..., j] == sum_k taps[k] * x[..., j+k]  ("valid" cross-correlation)."""
    m = np.zeros((n_in, n_out), np.float32)
    for k, t in enumerate(taps):
        for j in range(n_out):
            m[j + k, j] = t
    return m


def _ssim_block_kernel(c_ref, x_ref, y_ref, tw_ref, th_ref, o_ref, *, tb, H, W, K):
    # c_ref:  (2,) f32 in SMEM holding (c1, c2).
    # x_ref, y_ref: (tb, H, W) input tiles (native dtype) in VMEM.
    # tw_ref: (W, Wv) f32 Toeplitz (W-pass);  th_ref: (Hu, H) f32 Toeplitz (H-pass).
    # o_ref:  (1, 8, 128) f32 lane-dense per-block partial-sum slab.
    Hu = H - K + 1
    Wv = W - K + 1

    c1 = c_ref[0]
    c2 = c_ref[1]

    x = x_ref[...].astype(jnp.float32)        # (tb, H, W)
    y = y_ref[...].astype(jnp.float32)

    # Products computed once on the full tile (not per tap).
    xx = x * x
    yy = y * y
    xy = x * y

    tw = tw_ref[...]                          # (W, Wv)
    # Hoisted constant broadcast for the batched H-pass matmul
    # (JAX does not CSE broadcast_in_dim -> do it exactly once).
    th_b = jnp.broadcast_to(th_ref[...], (tb, Hu, H))

    def blur(z):
        # W-pass: contraction along the lane axis on the MXU.
        t = jnp.dot(z.reshape(tb * H, W), tw,
                    preferred_element_type=jnp.float32,
                    precision=lax.Precision.HIGHEST)            # (tb*H, Wv)
        t = t.reshape(tb, H, Wv)
        # H-pass: canonical batched matmul (b, m, k) @ (b, k, n) on the MXU.
        return jnp.einsum("buh,bhv->buv", th_b, t,
                          preferred_element_type=jnp.float32,
                          precision=lax.Precision.HIGHEST)      # (tb, Hu, Wv)

    mu1 = blur(x)
    mu2 = blur(y)
    ex2 = blur(xx)
    ey2 = blur(yy)
    exy = blur(xy)

    mu1_sq = mu1 * mu1
    mu2_sq = mu2 * mu2
    mu1_mu2 = mu1 * mu2
    sigma1_sq = ex2 - mu1_sq              # biased_cov=True -> compensation = 1.0
    sigma2_sq = ey2 - mu2_sq
    sigma12 = exy - mu1_mu2

    num = (2.0 * mu1_mu2 + c1) * (2.0 * sigma12 + c2)
    den = (mu1_sq + mu2_sq + c1) * (sigma1_sq + sigma2_sq + c2)

    # EUP approximate reciprocal + one Newton-Raphson step instead of a VALU
    # divide (den is strictly positive for max_val > 0).
    r = pl.reciprocal(den, approx=True)
    r = r * (2.0 - den * r)
    psum = jnp.sum(num * r)

    # Lane-dense, (8,128)-aligned per-block partial sum; wrapper reads [b,0,0].
    o_ref[...] = jnp.full((1, 8, 128), psum, dtype=jnp.float32)


@functools.partial(jax.jit, static_argnames=("filter_size", "sigma"))
def ssim_loss(x, y, filter_size=FILTER_SIZE, sigma=SIGMA):
    """1 - SSIM(x, y), reduction='mean', max_val=None (computed from target)."""
    assert x.shape == y.shape and x.ndim == 4
    N, C, H, W = x.shape
    B = N * C
    K = filter_size
    assert H >= K and W >= K, "image smaller than gaussian filter"
    Hu, Wv = H - K + 1, W - K + 1
    taps = _gauss_taps(K, sigma)

    # max_val hoisted out of the kernel (trivial fused reduction in XLA).
    max_val = jnp.max(y).astype(jnp.float32) - jnp.min(y).astype(jnp.float32)
    c = jnp.stack([(K1 * max_val) ** 2, (K2 * max_val) ** 2]).astype(jnp.float32)

    # Banded Toeplitz matrices for the separable blur (compile-time constants
    # shipped as tiny VMEM operands).
    tw = jnp.asarray(_toeplitz_valid(W, Wv, taps))           # (W, Wv)
    th = jnp.asarray(_toeplitz_valid(H, Hu, taps).T)         # (Hu, H)

    # Keep the native dtype through the DMA; cast per-tile inside the kernel.
    xb = x.reshape(B, H, W)
    yb = y.reshape(B, H, W)

    # Batch tile: ~1 MiB (f32) per input tile, at least min(4, B) grid steps
    # (v7x megacore + DMA/compute pipelining), and tb | B so no padding or
    # in-kernel masking is ever needed.
    row_f32_bytes = H * W * 4
    budget_rows = max(1, (1024 * 1024) // row_f32_bytes)
    min_blocks = min(4, B)
    tb_cap = max(1, min(budget_rows, B // min_blocks))
    tb = max(d for d in range(1, tb_cap + 1) if B % d == 0)
    nb = B // tb

    out = pl.pallas_call(
        functools.partial(_ssim_block_kernel, tb=tb, H=H, W=W, K=K),
        out_shape=jax.ShapeDtypeStruct((nb, 8, 128), jnp.float32),
        grid=(nb,),
        in_specs=[
            pl.BlockSpec(memory_space=pltpu.MemorySpace.SMEM),   # (c1, c2)
            pl.BlockSpec((tb, H, W), lambda b: (b, 0, 0)),       # x tile
            pl.BlockSpec((tb, H, W), lambda b: (b, 0, 0)),       # y tile
            pl.BlockSpec((W, Wv), lambda b: (0, 0)),             # Toeplitz W
            pl.BlockSpec((Hu, H), lambda b: (0, 0)),             # Toeplitz H
        ],
        out_specs=pl.BlockSpec((1, 8, 128), lambda b: (b, 0, 0)),
        compiler_params=pltpu.CompilerParams(
            dimension_semantics=("parallel",),        # shard B over TCs (v7x)
            vmem_limit_bytes=48 * 1024 * 1024,        # v7x-safe (64 MiB/TC)
        ),
    )(c, xb, yb, tw, th)

    total = jnp.sum(out[:, 0, 0])
    # Equal element counts per sample -> global mean == mean of per-sample means.
    return 1.0 - total / float(B * Hu * Wv)


def ssim_loss_ref(x, y, filter_size=FILTER_SIZE, sigma=SIGMA):
    """Pure-JAX reference mirroring the PyTorch module (for verification)."""
    kern = _fspecial_gauss_1d(filter_size, sigma)
    N, C, H, W = x.shape
    K = filter_size
    Hu, Wv = H - K + 1, W - K + 1
    max_val = jnp.max(y) - jnp.min(y)
    c1 = (K1 * max_val) ** 2
    c2 = (K2 * max_val) ** 2

    def blur(z):
        t = sum(kern[k] * z[..., :, k:k + Wv] for k in range(K))
        return sum(kern[k] * t[..., k:k + Hu, :] for k in range(K))

    mu1, mu2 = blur(x), blur(y)
    mu1_sq, mu2_sq, mu1_mu2 = mu1 * mu1, mu2 * mu2, mu1 * mu2
    s1 = blur(x * x) - mu1_sq
    s2 = blur(y * y) - mu2_sq
    s12 = blur(x * y) - mu1_mu2
    cs_map = (2 * s12 + c2) / (s1 + s2 + c2)
    ssim_map = (2 * mu1_mu2 + c1) / (mu1_sq + mu2_sq + c1) * cs_map
    ssim_val = ssim_map.mean(axis=(-1, -2, -3))  # per-sample
    return 1.0 - ssim_val.mean()


if __name__ == "__main__":
    key = jax.random.PRNGKey(0)
    k1, k2 = jax.random.split(key)
    N, C, H, W = 2, 4, 16, 16
    x = jax.random.uniform(k1, (N, C, H, W), dtype=jnp.float32)
    y = jax.random.uniform(k2, (N, C, H, W), dtype=jnp.float32)

    loss = ssim_loss(x, y)
    jax.block_until_ready(loss)

    ref = ssim_loss_ref(x, y)
    assert jnp.allclose(loss, ref, rtol=1e-4, atol=1e-4), (loss, ref)

    print("KERNEL_OK")
</pallas_src>

<mosaic_0001>
module attributes {stable_mosaic.version = 11 : i64} {
  func.func @_ssim_block_kernel(%arg0: i32, %arg1: memref<2xf32, #tpu.memory_space<smem>>, %arg2: memref<2x16x16xf32, #tpu.memory_space<vmem>>, %arg3: memref<2x16x16xf32, #tpu.memory_space<vmem>>, %arg4: memref<16x6xf32, #tpu.memory_space<vmem>>, %arg5: memref<6x16xf32, #tpu.memory_space<vmem>>, %arg6: memref<1x8x128xf32, #tpu.memory_space<vmem>>) attributes {dimension_semantics = [#tpu.dimension_semantics<parallel>], iteration_bounds = array<i64: 4>, scalar_prefetch = 0 : i64, scratch_operands = 0 : i64, tpu.core_type = #tpu.core_type<tc>, window_params = [{transform_indices = @transform_0, window_bounds = array<i64: 2>}, {transform_indices = @transform_1, window_bounds = array<i64: 2, 16, 16>}, {transform_indices = @transform_2, window_bounds = array<i64: 2, 16, 16>}, {pipeline_mode = #tpu.pipeline_mode<synchronous>, transform_indices = @transform_3, window_bounds = array<i64: 16, 6>}, {pipeline_mode = #tpu.pipeline_mode<synchronous>, transform_indices = @transform_4, window_bounds = array<i64: 6, 16>}, {transform_indices = @transform_5, window_bounds = array<i64: 1, 8, 128>}]} {
    %c0 = arith.constant 0 : index
    %0 = memref.load %arg1[%c0] : memref<2xf32, #tpu.memory_space<smem>>
    %c1 = arith.constant 1 : index
    %1 = memref.load %arg1[%c1] : memref<2xf32, #tpu.memory_space<smem>>
    %c0_0 = arith.constant 0 : index
    %c0_1 = arith.constant 0 : index
    %c0_2 = arith.constant 0 : index
    %2 = vector.load %arg2[%c0_0, %c0_1, %c0_2] : memref<2x16x16xf32, #tpu.memory_space<vmem>>, vector<2x16x16xf32>
    %c0_3 = arith.constant 0 : index
    %c0_4 = arith.constant 0 : index
    %c0_5 = arith.constant 0 : index
    %3 = vector.load %arg3[%c0_3, %c0_4, %c0_5] : memref<2x16x16xf32, #tpu.memory_space<vmem>>, vector<2x16x16xf32>
    %4 = arith.mulf %2, %2 : vector<2x16x16xf32>
    %5 = arith.mulf %3, %3 : vector<2x16x16xf32>
    %6 = arith.mulf %2, %3 : vector<2x16x16xf32>
    %c0_6 = arith.constant 0 : index
    %c0_7 = arith.constant 0 : index
    %7 = vector.load %arg4[%c0_6, %c0_7] : memref<16x6xf32, #tpu.memory_space<vmem>>, vector<16x6xf32>
    %c0_8 = arith.constant 0 : index
    %c0_9 = arith.constant 0 : index
    %8 = vector.load %arg5[%c0_8, %c0_9] : memref<6x16xf32, #tpu.memory_space<vmem>>, vector<6x16xf32>
    %9 = vector.shape_cast %8 : vector<6x16xf32> to vector<1x6x16xf32>
    %10 = vector.broadcast %9 : vector<1x6x16xf32> to vector<2x6x16xf32>
    %11 = vector.shape_cast %2 : vector<2x16x16xf32> to vector<32x16xf32>
    %cst = arith.constant dense<0.000000e+00> : vector<32x6xf32>
    %12 = tpu.matmul %11, %7, %cst {dimension_numbers = #tpu.dot_dimension_numbers<[1], [0], [0], [1], [0, 0, 1, 1], [], []>, precision = #tpu.contract_precision<fp32>} : vector<32x16xf32>, vector<16x6xf32>, vector<32x6xf32> -> vector<32x6xf32>
    %13 = vector.shape_cast %12 : vector<32x6xf32> to vector<2x16x6xf32>
    "tpu.trace_start"() <{level = 10 : i32, message = "buh,bhv->buv"}> : () -> ()
    %cst_10 = arith.constant dense<0.000000e+00> : vector<2x6x6xf32>
    %14 = tpu.matmul %10, %13, %cst_10 {dimension_numbers = #tpu.dot_dimension_numbers<[2], [1], [1], [2], [0, 0, 0, 1, 1, 2], [0], [0]>, precision = #tpu.contract_precision<fp32>} : vector<2x6x16xf32>, vector<2x16x6xf32>, vector<2x6x6xf32> -> vector<2x6x6xf32>
    "tpu.trace_stop"() : () -> ()
    %15 = vector.shape_cast %3 : vector<2x16x16xf32> to vector<32x16xf32>
    %cst_11 = arith.constant dense<0.000000e+00> : vector<32x6xf32>
    %16 = tpu.matmul %15, %7, %cst_11 {dimension_numbers = #tpu.dot_dimension_numbers<[1], [0], [0], [1], [0, 0, 1, 1], [], []>, precision = #tpu.contract_precision<fp32>} : vector<32x16xf32>, vector<16x6xf32>, vector<32x6xf32> -> vector<32x6xf32>
    %17 = vector.shape_cast %16 : vector<32x6xf32> to vector<2x16x6xf32>
    "tpu.trace_start"() <{level = 10 : i32, message = "buh,bhv->buv"}> : () -> ()
    %cst_12 = arith.constant dense<0.000000e+00> : vector<2x6x6xf32>
    %18 = tpu.matmul %10, %17, %cst_12 {dimension_numbers = #tpu.dot_dimension_numbers<[2], [1], [1], [2], [0, 0, 0, 1, 1, 2], [0], [0]>, precision = #tpu.contract_precision<fp32>} : vector<2x6x16xf32>, vector<2x16x6xf32>, vector<2x6x6xf32> -> vector<2x6x6xf32>
    "tpu.trace_stop"() : () -> ()
    %19 = vector.shape_cast %4 : vector<2x16x16xf32> to vector<32x16xf32>
    %cst_13 = arith.constant dense<0.000000e+00> : vector<32x6xf32>
    %20 = tpu.matmul %19, %7, %cst_13 {dimension_numbers = #tpu.dot_dimension_numbers<[1], [0], [0], [1], [0, 0, 1, 1], [], []>, precision = #tpu.contract_precision<fp32>} : vector<32x16xf32>, vector<16x6xf32>, vector<32x6xf32> -> vector<32x6xf32>
    %21 = vector.shape_cast %20 : vector<32x6xf32> to vector<2x16x6xf32>
    "tpu.trace_start"() <{level = 10 : i32, message = "buh,bhv->buv"}> : () -> ()
    %cst_14 = arith.constant dense<0.000000e+00> : vector<2x6x6xf32>
    %22 = tpu.matmul %10, %21, %cst_14 {dimension_numbers = #tpu.dot_dimension_numbers<[2], [1], [1], [2], [0, 0, 0, 1, 1, 2], [0], [0]>, precision = #tpu.contract_precision<fp32>} : vector<2x6x16xf32>, vector<2x16x6xf32>, vector<2x6x6xf32> -> vector<2x6x6xf32>
    "tpu.trace_stop"() : () -> ()
    %23 = vector.shape_cast %5 : vector<2x16x16xf32> to vector<32x16xf32>
    %cst_15 = arith.constant dense<0.000000e+00> : vector<32x6xf32>
    %24 = tpu.matmul %23, %7, %cst_15 {dimension_numbers = #tpu.dot_dimension_numbers<[1], [0], [0], [1], [0, 0, 1, 1], [], []>, precision = #tpu.contract_precision<fp32>} : vector<32x16xf32>, vector<16x6xf32>, vector<32x6xf32> -> vector<32x6xf32>
    %25 = vector.shape_cast %24 : vector<32x6xf32> to vector<2x16x6xf32>
    "tpu.trace_start"() <{level = 10 : i32, message = "buh,bhv->buv"}> : () -> ()
    %cst_16 = arith.constant dense<0.000000e+00> : vector<2x6x6xf32>
    %26 = tpu.matmul %10, %25, %cst_16 {dimension_numbers = #tpu.dot_dimension_numbers<[2], [1], [1], [2], [0, 0, 0, 1, 1, 2], [0], [0]>, precision = #tpu.contract_precision<fp32>} : vector<2x6x16xf32>, vector<2x16x6xf32>, vector<2x6x6xf32> -> vector<2x6x6xf32>
    "tpu.trace_stop"() : () -> ()
    %27 = vector.shape_cast %6 : vector<2x16x16xf32> to vector<32x16xf32>
    %cst_17 = arith.constant dense<0.000000e+00> : vector<32x6xf32>
    %28 = tpu.matmul %27, %7, %cst_17 {dimension_numbers = #tpu.dot_dimension_numbers<[1], [0], [0], [1], [0, 0, 1, 1], [], []>, precision = #tpu.contract_precision<fp32>} : vector<32x16xf32>, vector<16x6xf32>, vector<32x6xf32> -> vector<32x6xf32>
    %29 = vector.shape_cast %28 : vector<32x6xf32> to vector<2x16x6xf32>
    "tpu.trace_start"() <{level = 10 : i32, message = "buh,bhv->buv"}> : () -> ()
    %cst_18 = arith.constant dense<0.000000e+00> : vector<2x6x6xf32>
    %30 = tpu.matmul %10, %29, %cst_18 {dimension_numbers = #tpu.dot_dimension_numbers<[2], [1], [1], [2], [0, 0, 0, 1, 1, 2], [0], [0]>, precision = #tpu.contract_precision<fp32>} : vector<2x6x16xf32>, vector<2x16x6xf32>, vector<2x6x6xf32> -> vector<2x6x6xf32>
    "tpu.trace_stop"() : () -> ()
    %31 = arith.mulf %14, %14 : vector<2x6x6xf32>
    %32 = arith.mulf %18, %18 : vector<2x6x6xf32>
    %33 = arith.mulf %14, %18 : vector<2x6x6xf32>
    %34 = arith.subf %22, %31 : vector<2x6x6xf32>
    %35 = arith.subf %26, %32 : vector<2x6x6xf32>
    %36 = arith.subf %30, %33 : vector<2x6x6xf32>
    %cst_19 = arith.constant 2.000000e+00 : f32
    %37 = vector.broadcast %cst_19 : f32 to vector<2x6x6xf32>
    %38 = arith.mulf %37, %33 : vector<2x6x6xf32>
    %39 = vector.broadcast %0 : f32 to vector<2x6x6xf32>
    %40 = arith.addf %38, %39 : vector<2x6x6xf32>
    %cst_20 = arith.constant 2.000000e+00 : f32
    %41 = vector.broadcast %cst_20 : f32 to vector<2x6x6xf32>
    %42 = arith.mulf %41, %36 : vector<2x6x6xf32>
    %43 = vector.broadcast %1 : f32 to vector<2x6x6xf32>
    %44 = arith.addf %42, %43 : vector<2x6x6xf32>
    %45 = arith.mulf %40, %44 : vector<2x6x6xf32>
    %46 = arith.addf %31, %32 : vector<2x6x6xf32>
    %47 = vector.broadcast %0 : f32 to vector<2x6x6xf32>
    %48 = arith.addf %46, %47 : vector<2x6x6xf32>
    %49 = arith.addf %34, %35 : vector<2x6x6xf32>
    %50 = vector.broadcast %1 : f32 to vector<2x6x6xf32>
    %51 = arith.addf %49, %50 : vector<2x6x6xf32>
    %52 = arith.mulf %48, %51 : vector<2x6x6xf32>
    %53 = tpu.reciprocal %52 {approx = true} : vector<2x6x6xf32> -> vector<2x6x6xf32>
    %54 = arith.mulf %52, %53 : vector<2x6x6xf32>
    %cst_21 = arith.constant 2.000000e+00 : f32
    %55 = vector.broadcast %cst_21 : f32 to vector<2x6x6xf32>
    %56 = arith.subf %55, %54 : vector<2x6x6xf32>
    %57 = arith.mulf %53, %56 : vector<2x6x6xf32>
    %58 = arith.mulf %45, %57 : vector<2x6x6xf32>
    %59 = vector.shape_cast %58 : vector<2x6x6xf32> to vector<1x2x6x6xf32>
    %cst_22 = arith.constant dense<0.000000e+00> : vector<1xf32>
    %60 = vector.multi_reduction <add>, %59, %cst_22 [1, 2, 3] : vector<1x2x6x6xf32> to vector<1xf32>
    %61 = vector.shape_cast %60 : vector<1xf32> to vector<1x1x1x1xf32>
    %62 = vector.extract %61[0, 0, 0, 0] : f32 from vector<1x1x1x1xf32>
    %63 = vector.broadcast %62 : f32 to vector<1x8x128xf32>
    %c0_23 = arith.constant 0 : index
    %c0_24 = arith.constant 0 : index
    %c0_25 = arith.constant 0 : index
    %64 = vector.load %arg6[%c0_23, %c0_24, %c0_25] : memref<1x8x128xf32, #tpu.memory_space<vmem>>, vector<1x8x128xf32>
    tpu.vector_store %arg6[%c0_23, %c0_24, %c0_25], %63 {strides = array<i32>} : memref<1x8x128xf32, #tpu.memory_space<vmem>>, vector<1x8x128xf32>,
    return
  }
  func.func @transform_0(%arg0: i32) -> i32 {
    %c0_i32 = arith.constant 0 : i32
    %c0_i32_0 = arith.constant 0 : i32
    return %c0_i32 : i32
  }
  func.func @transform_1(%arg0: i32) -> (i32, i32, i32) {
    %c0_i32 = arith.constant 0 : i32
    %c0_i32_0 = arith.constant 0 : i32
    %c0_i32_1 = arith.constant 0 : i32
    return %arg0, %c0_i32, %c0_i32_0 : i32, i32, i32
  }
  func.func @transform_2(%arg0: i32) -> (i32, i32, i32) {
    %c0_i32 = arith.constant 0 : i32
    %c0_i32_0 = arith.constant 0 : i32
    %c0_i32_1 = arith.constant 0 : i32
    return %arg0, %c0_i32, %c0_i32_0 : i32, i32, i32
  }
  func.func @transform_3(%arg0: i32) -> (i32, i32) {
    %c0_i32 = arith.constant 0 : i32
    %c0_i32_0 = arith.constant 0 : i32
    %c0_i32_1 = arith.constant 0 : i32
    return %c0_i32, %c0_i32_0 : i32, i32
  }
  func.func @transform_4(%arg0: i32) -> (i32, i32) {
    %c0_i32 = arith.constant 0 : i32
    %c0_i32_0 = arith.constant 0 : i32
    %c0_i32_1 = arith.constant 0 : i32
    return %c0_i32, %c0_i32_0 : i32, i32
  }
  func.func @transform_5(%arg0: i32) -> (i32, i32, i32) {
    %c0_i32 = arith.constant 0 : i32
    %c0_i32_0 = arith.constant 0 : i32
    %c0_i32_1 = arith.constant 0 : i32
    return %arg0, %c0_i32, %c0_i32_0 : i32, i32, i32
  }
}

</mosaic_0001>

<bundles_post_ra>
// kernel: ssim_loss.1
= control target key start
LH: loop header
LB: loop body
LE: loop exit
PB: predicated region body
PF: predicated region fallthrough
CT: control target
= control target key end

     0   :  { %10 = vsyncpa [#allocation4], 0  ;;  %s4155_s0 = inlined_call_operand.vmem [shape: f32[2], index: 0, kind: input, shape index: {}]   ;;  %s4156_s1 = inlined_call_operand.hbm [shape: f32[8,16,16], index: 1, kind: input, shape index: {}]   ;;  %s4157_s2 = inlined_call_operand.vmem [shape: f32[8,16,16], index: 2, kind: input, shape index: {}]   ;;  %s4158_s3 = inlined_call_operand.vmem [shape: f32[16,6], index: 3, kind: input, shape index: {}]   ;;  %s4159_s4 = inlined_call_operand.vmem [shape: f32[6,16], index: 4, kind: input, shape index: {}]   ;;  %s4160_s5 = inlined_call_operand.vmem [shape: f32[4,8,128], index: 5, kind: output, shape index: {}]  }
   0x1   :  { %11 = vsyncpa [#allocation3], 0 }
   0x2   :  { %13 = vsyncpa [#allocation3 + $0x1], 0  ;;  %s3578_s18 = smov 0   ;;  %s3580_s19 = smov 0  }
   0x3   :  { %s3582_s20 = smov 0   ;;  %s3584_s21 = smov 0  }
   0x4 LB: > { %s3594_s22 = sadd.s32 4294967295, %s3543_s21   ;;  %s3596_s23 = sadd.s32 1, %s3543_s21   ;;  %s3543_s21 = sphi %s3584_s21, %s4177_s21   ;;  %s3539_s20 = sphi %s3582_s20, %s4176_s20   ;;  %s3535_s19 = sphi %s3580_s19, %s4175_s19   ;;  %s3531_s18 = sphi %s3578_s18, %s4174_s18  }
   0x5   : > { %s44_s24 = ssub.s32 %s3543_s21, %s3596_s23  ;;  %s47_s25 = sadd.s32 1, %s3539_s20 }
   0x6   : > { %p45_p0 = scmp.eq.s32.totalorder %s44_s24, 0  ;;  %p54_p1 = scmp.ne.s32.totalorder %s3539_s20, %s3535_s19 }
   0x7   : > { %p55_p2 = scmp.eq.s32.totalorder %s3543_s21, 0  ;;  %p60_p3 = scmp.ne.s32.totalorder %s3535_s19, %s3531_s18 }
   0x8   : > { %s3604_s26 = scalar_select %p45_p0, %s3539_s20, %s47_s25  }
   0x9   : > { %p56_p4 = por %p55_p2, %p54_p1  ;;  %p61_p5 = scmp.eq.s32.totalorder %s3594_s22, 0 }
   0xa   : > { %p3374_p6 = scmp.ge.s32.totalorder %s3543_s21, 1  ;;  %p165_p7 = scmp.lt.s32.totalorder %s3543_s21, 5 }
   0xb   : > { %p3609_p8 = por %p61_p5, %p60_p3  ;;  %s177_s6 = sshll.u32 %s4155_s0, 4  ;;  %s178_s6 = int_to_ptr.vmem [resolvable:$true] %s177_s6 }
   0xc   : > { %p3613_p9 = pnand %p3374_p6, %p165_p7  ;;  %p3411_p11 = scmp.lt.s32.totalorder %s3543_s21, 4 }
   0xd   : > { %s194_s7 = sand.u32 1, %s3539_s20   ;;  %s3545_s10 = smov [#allocation2]  }
   0xe   : > { %p3402_p10 = pneg %p3613_p9  ;;  %p3625_p13 = pnand %p3411_p11, %p56_p4 }
   0xf   : > { %s3377_s9 = sshll.u32 %s194_s7, 5  ;;  %s3392_s11 = sshll.u32 %s3543_s21, 5 }
  0x10   : > { %p3403_p12 = pnand %p3402_p10, %p61_p5  ;;  %s204_s14 = scalar_lea.hbm %s4156_s1, %s3392_s11 }
  0x11   : > { %s198_s15 = scalar_lea.vmem [#allocation5], %s3377_s9  ;;  %s205_s17 = sshll.u32 %s204_s14, 4  ;;  %s206_s17 = int_to_ptr.hbm [resolvable:$true] %s205_s17 }
  0x12   : > { %3405 = dma.vmem_to_smem (!%p3403_p12), %s178_s6, 16, %s3545_s10, [#allocation4]  }
  0x13   : > { %s207_s16 = sshll.u32 %s198_s15, 4  ;;  %s195_s18 = scalar_lea.sflag [#allocation3], %s194_s7  ;;  %s208_s16 = int_to_ptr.vmem [resolvable:$true] %s207_s16 }
  0x14   : > { %s3475_s24 = sshra.s32 %s206_s17, 4  ;;  %p3479_p1 = pneg %p3625_p13  ;;  %s3476_s24 = int_to_ptr.hbm [resolvable:$true] %s3475_s24 }
  0x15   : > { %s3477_s25 = scalar_lea.hbm %s3476_s24, 32  ;;  %s3482_s30 = scalar_lea.hbm %s4156_s1, 128 }
  0x16   : > { %p3478_p0 = scmp.ne.s32.totalorder %s3476_s24, %s3477_s25  ;;  %p3483_p4 = scmp.lt.s32.totalorder %s3476_s24, %s4156_s1 }
  0x17   : > { %p3484_p6 = scmp.lt.s32.totalorder %s3482_s30, %s3477_s25 }
  0x18   : > { %p3480_p2 = pnand %p3479_p1, %p3478_p0 }
  0x19   : > { %p3485_p7 = por %p3484_p6, %p3483_p4 }
  0x1a   : > { %p3481_p3 = pneg %p3480_p2 }
  0x1c   : > { %p3486_p10 = pnand %p3485_p7, %p3481_p3 }
  0x1e   : > { %3489 = shalt.err (!%p3486_p10)
}
  0x1f   : > { %s3546_s7 = smov 128   ;;  %s3547_s9 = smov 8  }
  0x20   : > { %3409 = dma.hbm_to_vmem [thread:$0]  (!%p3625_p13), %s206_s17, 512, %s208_s16, %s195_s18, %s3546_s7, %s3546_s7, %s3547_s9  }
  0x21   : > { %229 = sbr.rel (%p3613_p9) target bundleno = 1409 (0x581), region = 40 }
  0x26   : > { %3522 = dma.done.wait (%p61_p5), [#allocation4], 16  }
  0x27   : > { %3524 = vsyncadd (%p61_p5), [#allocation4], 4294967280  ;;  %s236_s11 = sand.u32 1, %s3535_s19  }
  0x28   : > { %s3383_s12 = sshll.u32 %s236_s11, 5  ;;  %s237_s13 = scalar_lea.sflag [#allocation3], %s236_s11 }
  0x29   : > { %s3649_s14 = scalar_lea.vmem [#allocation5], %s3383_s12 }
  0x2a   : > { %3526 = dma.done.wait (%p3609_p8), %s237_s13, 512  }
  0x2b   : > { %3528 = vsyncadd (%p3609_p8), %s237_s13, 4294966784 }
  0x2c   : > { %246 = sfence }
  0x2d   : > { %v309_v0 = vld [vmem:[%s4158_s3 + $0x8] sm:$0xff]  ;;  %v308_v1 = vld [vmem:[%s4158_s3] sm:$0xff]  ;;  %vm311_vm0 = vcmask 130048   ;;  %v3676_v9 = vld [vmem:[%s3649_s14 + $0x10] sm:$0xff]  ;;  %s3384_s18 = sshll.u32 %s3594_s22, 1  ;;  %s3388_s30 = sld [smem:[#allocation2 + $0x1]] }
  0x2e   : > { %v3662_v2 = vld [vmem:[%s3649_s14] sm:$0xff]  ;;  %v3664_v3 = vand.u32 4294901760, %v309_v0  ;;  %v3666_v4 = vand.u32 4294901760, %v308_v1  ;;  %v3671_v6 = vld [vmem:[%s3649_s14 + $0x8] sm:$0xff]  ;;  %v319_v17 = vsel %vm311_vm0, %v3676_v9, 0  ;;  %v3709_v27 = vld [vmem:[%s3649_s14 + $0x18] sm:$0xff] }
  0x2f   : > { %v313_v5 = vsel %vm311_vm0, %v3662_v2, 0  ;;  %v316_v8 = vsel %vm311_vm0, %v3671_v6, 0  ;;  %v358_v23 = vand.u32 4294901760, %v319_v17  ;;  %v322_v30 = vsel %vm311_vm0, %v3709_v27, 0  ;;  %v310_v50 = vld [vmem:[%s4159_s4] sm:$0x3f] }
  0x30   : > { %v342_v7 = vand.u32 4294901760, %v313_v5  ;;  %v3679_v10 = vsub.f32 %v309_v0, %v3664_v3  ;;  %339 = vmatpush.msra.mxu0 %v3664_v3  ;;  %v3683_v11 = vsub.f32 %v308_v1, %v3666_v4  ;;  %474 = vmatpush.msra.mxu3 %v3664_v3  ;;  %v350_v12 = vand.u32 4294901760, %v316_v8  ;;  %p276_p5 = scmp.lt.s32.totalorder %s3384_s18, 7  ;;  %s286_s6 = sld [smem:[#allocation2]] }
  0x31   : > { %v359_v29 = vsub.f32 %v319_v17, %v358_v23  ;;  %v366_v33 = vand.u32 4294901760, %v322_v30  ;;  %v577_v53 = vsel %vm311_vm0, %v310_v50, 0  ;;  %vm3269_vm1 = vcmask 46080   ;;  %p282_p8 = scmp.lt.s32.totalorder %s3594_s22, 3 }
  0x32   : > { %v343_v13 = vsub.f32 %v313_v5, %v342_v7  ;;  %434 = vmatpush.msra.mxu2 %v3679_v10  ;;  %341 = vmatpush.msra.mxu0 %v3666_v4  ;;  %v3689_v14 = vand.u32 4294901760, %v3679_v10  ;;  %v3692_v15 = vand.u32 4294901760, %v3683_v11  ;;  %v351_v16 = vsub.f32 %v316_v8, %v350_v12  ;;  %s4179_s18 = smov (!%p276_p5, %s3384_s18), 7 }
  0x33   : > { %476 = vmatpush.msra.mxu3 %v3666_v4  ;;  %v360_v32 = vand.u32 4294901760, %v359_v29  ;;  %v367_v35 = vsub.f32 %v322_v30, %v366_v33  ;;  %v3721_v55 = vand.u32 4294901760, %v577_v53  ;;  %s3393_s24 = sshll.u32 %s4179_s18, 4  ;;  %s4181_s22 = smov (!%p282_p8, %s3594_s22), 3 }
  0x34   : > { %v344_v18 = vand.u32 4294901760, %v343_v13  ;;  %437 = vmatpush.msra.mxu2 %v3683_v11  ;;  %v392_v19 = vsub.f32 %v3679_v10, %v3689_v14  ;;  %v398_v20 = vsub.f32 %v3683_v11, %v3692_v15  ;;  %519 = vmatpush.msrb.mxu0 %v3689_v14  ;;  %v352_v22 = vand.u32 4294901760, %v351_v16  ;;  %s3737_s21 = scalar_lea.vmem %s4157_s2, %s3393_s24  ;;  %s3387_s10 = sshll.u32 %s4181_s22, 3 }
  0x35   : > { %440 = vmatmul.f32.vlgmr.msra.gmra.mxu2 %v343_v13  ;;  %v361_v34 = vsub.f32 %v359_v29, %v360_v32  ;;  %v368_v37 = vand.u32 4294901760, %v367_v35  ;;  %v3725_v62 = vsub.f32 %v577_v53, %v3721_v55  ;;  %s285_s11 = scalar_lea.vmem %s4160_s5, %s3387_s10 }
  0x36   : > { %v345_v21 = vsub.f32 %v343_v13, %v344_v18  ;;  %480 = vmatmul.f32.vlgmr.msra.gmra.mxu3 %v344_v18  ;;  %v3703_v24 = vand.u32 4294901760, %v392_v19  ;;  %v3705_v25 = vand.u32 4294901760, %v398_v20  ;;  %523 = vmatpush.msrb.mxu0 %v3692_v15  ;;  %v353_v28 = vsub.f32 %v351_v16, %v352_v22 }
  0x37   : > { %v362_v36 = vand.u32 4294901760, %v361_v34  ;;  %v369_v38 = vsub.f32 %v367_v35, %v368_v37  ;;  %v3728_v5 = vand.u32 4294901760, %v3725_v62 }
  0x38   : > { %v346_v26 = vand.u32 4294901760, %v345_v21  ;;  %394 = vmatpush.msra.mxu1 %v3703_v24  ;;  %v354_v31 = vand.u32 4294901760, %v353_v28 }
  0x39   : > { %v370_v39 = vand.u32 4294901760, %v369_v38  ;;  %v600_v19 = vsub.f32 %v3725_v62, %v3728_v5 }
  0x3a   : > { %347 = vmatmul.f32.vlgmr.msra.gmra.mxu0 %v346_v26  ;;  %400 = vmatpush.msra.mxu1 %v3705_v25 }
  0x3b   : > { %402 = vmatmul.f32.vlgmr.msra.gmra.mxu1 %v342_v7  ;;  %v3732_v26 = vand.u32 4294901760, %v600_v19 }
  0x3c   : > { %556 = vmatpush.msrb.mxu1 %v3664_v3 }
  0x3d   : > { %445 = vmatmul.f32.gmra.mxu2 %v351_v16 }
  0x3e   : > { %486 = vmatmul.f32.gmra.mxu3 %v352_v22  ;;  %558 = vmatpush.msrb.mxu1 %v3666_v4 }
  0x42   : > { %355 = vmatmul.f32.gmra.mxu0 %v354_v31 }
  0x43   : > { %406 = vmatmul.f32.gmra.mxu1 %v350_v12 }
  0x45   : > { %450 = vmatmul.f32.gmra.mxu2 %v359_v29 }
  0x46   : > { %492 = vmatmul.f32.gmra.mxu3 %v360_v32 }
  0x4a   : > { %363 = vmatmul.f32.gmra.mxu0 %v362_v36  ;;  %v3740_v36 = vld [vmem:[%s3737_s21] sm:$0xff] }
  0x4b   : > { %410 = vmatmul.f32.gmra.mxu1 %v358_v23 }
  0x4d   : > { %455 = vmatmul.f32.gmra.mxu2 %v367_v35 }
  0x4e   : > { %498 = vmatmul.f32.gmra.mxu3 %v368_v37 }
  0x52   : > { %371 = vmatmul.f32.gmra.mxu0 %v370_v39 }
  0x53   : > { %414 = vmatmul.f32.gmra.mxu1 %v366_v33 }
  0x5a   : > { %525 = vmatmul.f32.vlgmr.msrb.gmra.mxu0 %v342_v7 }
  0x5b   : > { %560 = vmatmul.f32.vlgmr.msrb.gmra.mxu1 %v342_v7 }
  0x62   : > { %529 = vmatmul.f32.gmra.mxu0 %v350_v12 }
  0x63   : > { %564 = vmatmul.f32.gmra.mxu1 %v350_v12 }
  0x6a   : > { %533 = vmatmul.f32.gmra.mxu0 %v358_v23 }
  0x6b   : > { %568 = vmatmul.f32.gmra.mxu1 %v358_v23 }
  0x72   : > { %537 = vmatmul.f32.gmra.mxu0 %v366_v33 }
  0x73   : > { %572 = vmatmul.f32.gmra.mxu1 %v366_v33 }
  0xb7   : > { %v348_v40 = vpop.f32.mrf.mxu0 }
  0xb8   : > { %v403_v41 = vpop.f32.mrf.mxu1  ;;  %v441_v45 = vpop.f32.mrf.mxu2 }
  0xb9   : > { %v481_v47 = vpop.f32.mrf.mxu3  ;;  %v404_v48 = vadd.f32 %v403_v41, %v348_v40 }
  0xbb   : > { %v442_v52 = vadd.f32 %v441_v45, %v404_v48 }
  0xbd   : > { %v482_v56 = vadd.f32 %v481_v47, %v442_v52 }
  0xbf   : > { %v356_v42 = vpop.f32.mrf.mxu0 }
  0xc0   : > { %v407_v43 = vpop.f32.mrf.mxu1  ;;  %v446_v54 = vpop.f32.mrf.mxu2 }
  0xc1   : > { %v408_v57 = vadd.f32 %v407_v43, %v356_v42  ;;  %v487_v58 = vpop.f32.mrf.mxu3 }
  0xc3   : > { %v447_v63 = vadd.f32 %v446_v54, %v408_v57 }
  0xc5   : > { %v488_v7 = vadd.f32 %v487_v58, %v447_v63 }
  0xc7   : > { %v364_v44 = vpop.f32.mrf.mxu0 }
  0xc8   : > { %v411_v46 = vpop.f32.mrf.mxu1  ;;  %v451_v1 = vpop.f32.mrf.mxu2 }
  0xc9   : > { %v412_v8 = vadd.f32 %v411_v46, %v364_v44  ;;  %v493_v17 = vpop.f32.mrf.mxu3  ;;  %v898_v44 = vsel %vm311_vm0, %v3740_v36, 0 }
  0xcb   : > { %v452_v20 = vadd.f32 %v451_v1, %v412_v8  ;;  %v3765_v1 = vld [vmem:[%s3737_s21 + $0x10] sm:$0xff] }
  0xcd   : > { %v494_v28 = vadd.f32 %v493_v17, %v452_v20  ;;  %v904_v17 = vsel %vm311_vm0, %v3765_v1, 0 }
  0xcf   : > { %v372_v49 = vpop.f32.mrf.mxu0 }
  0xd0   : > { %v415_v51 = vpop.f32.mrf.mxu1  ;;  %v456_v32 = vpop.f32.mrf.mxu2 }
  0xd1   : > { %v416_v29 = vadd.f32 %v415_v51, %v372_v49  ;;  %v499_v42 = vpop.f32.mrf.mxu3  ;;  %v3747_v49 = vand.u32 4294901760, %v898_v44  ;;  %v3750_v51 = vld [vmem:[%s3737_s21 + $0x8] sm:$0xff] }
  0xd2   : > { %v901_v58 = vsel %vm311_vm0, %v3750_v51, 0 }
  0xd3   : > { %v457_v38 = vadd.f32 %v456_v32, %v416_v29  ;;  %v3761_v63 = vand.u32 4294901760, %v901_v58 }
  0xd5   : > { %v500_v45 = vadd.f32 %v499_v42, %v457_v38 }
  0xd7   : > { %v526_v59 = vpop.f32.mrf.mxu0 }
  0xd8   : > { %v527_v60 = vadd.f32 %v526_v59, %v482_v56  ;;  %v561_v61 = vpop.f32.mrf.mxu1  ;;  %v3756_v56 = vsub.f32 %v898_v44, %v3747_v49 }
  0xda   : > { %v562_v0 = vadd.f32 %v561_v61, %v527_v60  ;;  %v929_v61 = vand.u32 4294901760, %v3756_v56 }
  0xdc   : > { %v595_v12 = vand.u32 4294901760, %v562_v0 }
  0xde   : > { %v627_v21 = vsub.f32 %v562_v0, %v595_v12 }
  0xdf   : > { %v530_v13 = vpop.f32.mrf.mxu0 }
  0xe0   : > { %v531_v16 = vadd.f32 %v530_v13, %v488_v7  ;;  %v565_v18 = vpop.f32.mrf.mxu1  ;;  %v628_v31 = vand.u32 4294901760, %v627_v21  ;;  %v936_v13 = vsub.f32 %v901_v58, %v3761_v63 }
  0xe2   : > { %v566_v22 = vadd.f32 %v565_v18, %v531_v16  ;;  %v629_v41 = vsub.f32 %v627_v21, %v628_v31  ;;  %v937_v20 = vand.u32 4294901760, %v936_v13 }
  0xe4   : > { %v593_v23 = vand.u32 4294901760, %v566_v22  ;;  %v630_v47 = vand.u32 4294901760, %v629_v41 }
  0xe6   : > { %v621_v30 = vsub.f32 %v566_v22, %v593_v23  ;;  %594 = vmatpush.msrb.mxu2 %v593_v23  ;;  %v3785_v22 = vld [vmem:[%s3737_s21 + $0x18] sm:$0xff] }
  0xe7   : > { %v534_v33 = vpop.f32.mrf.mxu0  ;;  %v907_v29 = vsel %vm311_vm0, %v3785_v22, 0 }
  0xe8   : > { %v535_v34 = vadd.f32 %v534_v33, %v494_v28  ;;  %596 = vmatpush.msrb.mxu2 %v595_v12  ;;  %v622_v35 = vand.u32 4294901760, %v621_v30  ;;  %v569_v37 = vpop.f32.mrf.mxu1  ;;  %v951_v32 = vand.u32 4294901760, %v907_v29 }
  0xe9   : > { %602 = vmatmul.f32.vlgmr.msrb.gmra.mxu2 %v3732_v26 }
  0xea   : > { %v570_v39 = vadd.f32 %v569_v37, %v535_v34  ;;  %653 = vmatpush.msra.mxu2 %v621_v30  ;;  %v623_v40 = vsub.f32 %v621_v30, %v622_v35  ;;  %v952_v34 = vsub.f32 %v907_v29, %v951_v32 }
  0xec   : > { %656 = vmatpush.msra.mxu2 %v627_v21  ;;  %v624_v43 = vand.u32 4294901760, %v623_v40  ;;  %v3745_v46 = vand.u32 4294901760, %v570_v39  ;;  %v943_v21 = vand.u32 4294901760, %v904_v17  ;;  %v953_v37 = vand.u32 4294901760, %v952_v34 }
  0xee   : > { %705 = vmatpush.msrb.mxu2 %v622_v35  ;;  %625 = vmatpush.msrb.mxu3 %v624_v43  ;;  %v786_v53 = vsub.f32 %v570_v39, %v3745_v46  ;;  %v944_v28 = vsub.f32 %v904_v17, %v943_v21  ;;  %v954_v38 = vsub.f32 %v952_v34, %v953_v37 }
  0xef   : > { %v538_v48 = vpop.f32.mrf.mxu0 }
  0xf0   : > { %709 = vmatpush.msrb.mxu2 %v628_v31  ;;  %v539_v50 = vadd.f32 %v538_v48, %v500_v45  ;;  %631 = vmatpush.msrb.mxu3 %v630_v47  ;;  %v573_v52 = vpop.f32.mrf.mxu1  ;;  %v787_v60 = vand.u32 4294901760, %v786_v53  ;;  %v945_v31 = vand.u32 4294901760, %v944_v28  ;;  %v955_v39 = vand.u32 4294901760, %v954_v38 }
  0xf1   : > { %633 = vmatmul.f32.vlgmr.msrb.gmra.mxu3 %v3721_v55  ;;  %659 = vmatmul.f32.vlgmr.msra.gmra.mxu2 %v3725_v62 }
  0xf2   : > { %v574_v54 = vadd.f32 %v573_v52, %v539_v50  ;;  %678 = vmatpush.msra.mxu3 %v593_v23  ;;  %v788_v8 = vsub.f32 %v786_v53, %v787_v60  ;;  %v946_v33 = vsub.f32 %v944_v28, %v945_v31 }
  0xf4   : > { %v752_v57 = vand.u32 4294901760, %v574_v54  ;;  %680 = vmatpush.msra.mxu3 %v595_v12  ;;  %v789_v18 = vand.u32 4294901760, %v788_v8  ;;  %v947_v35 = vand.u32 4294901760, %v946_v33 }
  0xf6   : > { %730 = vmatpush.msrb.mxu3 %v593_v23  ;;  %v780_v59 = vsub.f32 %v574_v54, %v752_v57  ;;  %753 = vmatpush.msra.mxu2 %v752_v57  ;;  %v938_v23 = vsub.f32 %v936_v13, %v937_v20 }
  0xf7   : > { %837 = vmatpush.msra.mxu1 %v752_v57 }
  0xf8   : > { %732 = vmatpush.msrb.mxu3 %v595_v12  ;;  %755 = vmatpush.msra.mxu2 %v3745_v46  ;;  %v781_v0 = vand.u32 4294901760, %v780_v59  ;;  %v930_v12 = vsub.f32 %v3756_v56, %v929_v61  ;;  %v939_v30 = vand.u32 4294901760, %v938_v23 }
  0xf9   : > { %812 = vmatpush.msra.mxu0 %v780_v59  ;;  %839 = vmatpush.msra.mxu1 %v3745_v46 }
  0xfa   : > { %684 = vmatmul.f32.vlgmr.msra.gmra.mxu3 %v3728_v5  ;;  %711 = vmatmul.f32.vlgmr.msrb.gmra.mxu2 %v3721_v55  ;;  %v782_v7 = vsub.f32 %v780_v59, %v781_v0  ;;  %v931_v19 = vand.u32 4294901760, %v930_v12 }
  0xfb   : > { %815 = vmatpush.msra.mxu0 %v786_v53  ;;  %864 = vmatpush.msrb.mxu2 %v781_v0 }
  0xfc   : > { %818 = vmatmul.f32.vlgmr.msra.gmra.mxu0 %v3725_v62  ;;  %843 = vmatmul.f32.vlgmr.msra.gmra.mxu1 %v3728_v5  ;;  %v783_v16 = vand.u32 4294901760, %v782_v7 }
  0xfd   : > { %924 = vmatpush.msrb.mxu0 %v3664_v3  ;;  %868 = vmatpush.msrb.mxu2 %v787_v60 }
  0xfe   : > { %979 = vmatpush.msrb.mxu1 %v3703_v24  ;;  %784 = vmatpush.msra.mxu3 %v783_v16 }
  0xff   : > { %926 = vmatpush.msrb.mxu0 %v3666_v4 }
 0x100   : > { %985 = vmatpush.msrb.mxu1 %v3705_v25  ;;  %790 = vmatpush.msra.mxu3 %v789_v18 }
 0x101   : > { %1104 = vmatpush.msra.mxu0 %v3689_v14 }
 0x102   : > { %1141 = vmatpush.msra.mxu1 %v3664_v3  ;;  %734 = vmatmul.f32.vlgmr.msrb.gmra.mxu3 %v3721_v55 }
 0x103   : > { %1108 = vmatpush.msra.mxu0 %v3692_v15  ;;  %761 = vmatmul.f32.vlgmr.msra.gmra.mxu2 %v3732_v26 }
 0x104   : > { %889 = vmatpush.msrb.mxu3 %v752_v57  ;;  %932 = vmatmul.f32.vlgmr.msrb.gmra.mxu0 %v931_v19 }
 0x105   : > { %1019 = vmatpush.msra.mxu2 %v3679_v10  ;;  %987 = vmatmul.f32.vlgmr.msrb.gmra.mxu1 %v3747_v49 }
 0x106   : > { %891 = vmatpush.msrb.mxu3 %v3745_v46  ;;  %1143 = vmatpush.msra.mxu1 %v3666_v4 }
 0x107   : > { %1022 = vmatpush.msra.mxu2 %v3683_v11 }
 0x10a   : > { %792 = vmatmul.f32.vlgmr.msra.gmra.mxu3 %v3721_v55 }
 0x10b   : > { %870 = vmatmul.f32.vlgmr.msrb.gmra.mxu2 %v3721_v55  ;;  %1059 = vmatpush.msra.mxu3 %v3664_v3 }
 0x10c   : > { %940 = vmatmul.f32.gmra.mxu0 %v939_v30 }
 0x10d   : > { %991 = vmatmul.f32.gmra.mxu1 %v3761_v63  ;;  %1061 = vmatpush.msra.mxu3 %v3666_v4 }
 0x112   : > { %893 = vmatmul.f32.vlgmr.msrb.gmra.mxu3 %v3721_v55 }
 0x113   : > { %1025 = vmatmul.f32.vlgmr.msra.gmra.mxu2 %v3756_v56 }
 0x114   : > { %948 = vmatmul.f32.gmra.mxu0 %v947_v35 }
 0x115   : > { %995 = vmatmul.f32.gmra.mxu1 %v943_v21 }
 0x11a   : > { %1065 = vmatmul.f32.vlgmr.msra.gmra.mxu3 %v929_v61 }
 0x11b   : > { %1030 = vmatmul.f32.gmra.mxu2 %v936_v13 }
 0x11c   : > { %956 = vmatmul.f32.gmra.mxu0 %v955_v39 }
 0x11d   : > { %999 = vmatmul.f32.gmra.mxu1 %v951_v32 }
 0x122   : > { %1071 = vmatmul.f32.gmra.mxu3 %v937_v20 }
 0x123   : > { %1035 = vmatmul.f32.gmra.mxu2 %v944_v28 }
 0x124   : > { %1110 = vmatmul.f32.vlgmr.msra.gmra.mxu0 %v3747_v49 }
 0x125   : > { %1145 = vmatmul.f32.vlgmr.msra.gmra.mxu1 %v3747_v49 }
 0x12a   : > { %1077 = vmatmul.f32.gmra.mxu3 %v945_v31 }
 0x12b   : > { %1040 = vmatmul.f32.gmra.mxu2 %v952_v34 }
 0x12c   : > { %1114 = vmatmul.f32.gmra.mxu0 %v3761_v63 }
 0x12d   : > { %1149 = vmatmul.f32.gmra.mxu1 %v3761_v63 }
 0x132   : > { %1083 = vmatmul.f32.gmra.mxu3 %v953_v37 }
 0x134   : > { %1118 = vmatmul.f32.gmra.mxu0 %v943_v21 }
 0x135   : > { %1153 = vmatmul.f32.gmra.mxu1 %v943_v21 }
 0x13c   : > { %1122 = vmatmul.f32.gmra.mxu0 %v951_v32 }
 0x13d   : > { %1157 = vmatmul.f32.gmra.mxu1 %v951_v32 }
 0x16c   : > { %v3810_v40 = vpop.f32.mrf.mxu2 }
 0x174   : > { %v3812_v41 = vpop.f32.mrf.mxu3  ;;  %v3814_v42 = vpop.f32.mrf.mxu2 }
 0x179   : > { %v3816_v43 = vpop.f32.mrf.mxu0  ;;  %v3818_v44 = vpop.f32.mrf.mxu1 }
 0x17d   : > { %v3820_v45 = vpop.f32.mrf.mxu3  ;;  %v3822_v46 = vpop.f32.mrf.mxu2 }
 0x181   : > { %v933_v47 = vpop.f32.mrf.mxu0 }
 0x182   : > { %v988_v48 = vpop.f32.mrf.mxu1 }
 0x183   : > { %v989_v0 = vadd.f32 %v988_v48, %v933_v47 }
 0x185   : > { %v3824_v49 = vpop.f32.mrf.mxu3 }
 0x186   : > { %v3826_v50 = vpop.f32.mrf.mxu2 }
 0x189   : > { %v941_v52 = vpop.f32.mrf.mxu0 }
 0x18a   : > { %v992_v53 = vpop.f32.mrf.mxu1 }
 0x18b   : > { %v993_v19 = vadd.f32 %v992_v53, %v941_v52  ;;  %v296_v53 = vmul.f32 %v3662_v2, %v3662_v2 }
 0x18d   : > { %v3828_v54 = vpop.f32.mrf.mxu3 }
 0x18e   : > { %v3830_v56 = vpop.f32.mrf.mxu2 }
 0x18f   : > { %4164 = vst [vmem:[#allocation8_spill] sm:$0xff] %v3830_v56 }
 0x191   : > { %v949_v57 = vpop.f32.mrf.mxu0 }
 0x192   : > { %v996_v58 = vpop.f32.mrf.mxu1 }
 0x193   : > { %v997_v34 = vadd.f32 %v996_v58, %v949_v57 }
 0x195   : > { %v3832_v59 = vpop.f32.mrf.mxu3 }
 0x196   : > { %4165 = vst [vmem:[#allocation9_spill] sm:$0xff] %v3832_v59  ;;  %v1026_v60 = vpop.f32.mrf.mxu2 }
 0x197   : > { %v1027_v8 = vadd.f32 %v1026_v60, %v989_v0 }
 0x199   : > { %v957_v61 = vpop.f32.mrf.mxu0 }
 0x19a   : > { %v1000_v63 = vpop.f32.mrf.mxu1 }
 0x19b   : > { %v1001_v57 = vadd.f32 %v1000_v63, %v957_v61 }
 0x19d   : > { %v1066_v7 = vpop.f32.mrf.mxu3 }
 0x19e   : > { %v1031_v12 = vpop.f32.mrf.mxu2  ;;  %v1067_v13 = vadd.f32 %v1066_v7, %v1027_v8 }
 0x19f   : > { %v1032_v23 = vadd.f32 %v1031_v12, %v993_v19  ;;  %v1480_v19 = vsel %vm311_vm0, %v296_v53, 0 }
 0x1a1   : > { %v1111_v16 = vpop.f32.mrf.mxu0 }
 0x1a2   : > { %v1112_v17 = vadd.f32 %v1111_v16, %v1067_v13  ;;  %v1146_v18 = vpop.f32.mrf.mxu1 }
 0x1a4   : > { %v1147_v20 = vadd.f32 %v1146_v18, %v1112_v17 }
 0x1a5   : > { %v1072_v21 = vpop.f32.mrf.mxu3 }
 0x1a6   : > { %v1177_v28 = vand.u32 4294901760, %v1147_v20  ;;  %v1073_v29 = vadd.f32 %v1072_v21, %v1032_v23  ;;  %v1036_v30 = vpop.f32.mrf.mxu2 }
 0x1a7   : > { %v1037_v39 = vadd.f32 %v1036_v30, %v997_v34  ;;  %v3840_v30 = vand.u32 4294901760, %v1480_v19 }
 0x1a8   : > { %v1209_v35 = vsub.f32 %v1147_v20, %v1177_v28 }
 0x1a9   : > { %v1115_v31 = vpop.f32.mrf.mxu0 }
 0x1aa   : > { %v1116_v32 = vadd.f32 %v1115_v31, %v1073_v29  ;;  %v1150_v33 = vpop.f32.mrf.mxu1  ;;  %v1210_v0 = vand.u32 4294901760, %v1209_v35 }
 0x1ac   : > { %v1151_v37 = vadd.f32 %v1150_v33, %v1116_v32  ;;  %v1211_v17 = vsub.f32 %v1209_v35, %v1210_v0  ;;  %v297_v32 = vmul.f32 %v3671_v6, %v3671_v6 }
 0x1ad   : > { %v1078_v38 = vpop.f32.mrf.mxu3 }
 0x1ae   : > { %v1175_v47 = vand.u32 4294901760, %v1151_v37  ;;  %v1079_v60 = vadd.f32 %v1078_v38, %v1037_v39  ;;  %v1041_v13 = vpop.f32.mrf.mxu2  ;;  %v1212_v29 = vand.u32 4294901760, %v1211_v17  ;;  %v1483_v38 = vsel %vm311_vm0, %v297_v32, 0 }
 0x1af   : > { %v1042_v20 = vadd.f32 %v1041_v13, %v1001_v57 }
 0x1b0   : > { %v1203_v48 = vsub.f32 %v1151_v37, %v1175_v47  ;;  %1176 = vmatpush.msrb.mxu2 %v1175_v47 }
 0x1b1   : > { %v1119_v52 = vpop.f32.mrf.mxu0 }
 0x1b2   : > { %v1120_v7 = vadd.f32 %v1119_v52, %v1079_v60  ;;  %1178 = vmatpush.msrb.mxu2 %v1177_v28  ;;  %v1154_v8 = vpop.f32.mrf.mxu1  ;;  %v1204_v12 = vand.u32 4294901760, %v1203_v48  ;;  %v3852_v60 = vand.u32 4294901760, %v1483_v38  ;;  %v298_v52 = vmul.f32 %v3676_v9, %v3676_v9 }
 0x1b3   : > { %1184 = vmatmul.f32.vlgmr.msrb.gmra.mxu2 %v3732_v26 }
 0x1b4   : > { %v1155_v58 = vadd.f32 %v1154_v8, %v1120_v7  ;;  %1235 = vmatpush.msra.mxu2 %v1203_v48  ;;  %v1205_v16 = vsub.f32 %v1203_v48, %v1204_v12  ;;  %v1518_v7 = vsub.f32 %v1483_v38, %v3852_v60  ;;  %v1486_v8 = vsel %vm311_vm0, %v298_v52, 0 }
 0x1b5   : > { %v1084_v18 = vpop.f32.mrf.mxu3 }
 0x1b6   : > { %1238 = vmatpush.msra.mxu2 %v1209_v35  ;;  %v1206_v21 = vand.u32 4294901760, %v1205_v16  ;;  %v3838_v2 = vand.u32 4294901760, %v1155_v58  ;;  %v1085_v23 = vadd.f32 %v1084_v18, %v1042_v20  ;;  %v3848_v35 = vsub.f32 %v1480_v19, %v3840_v30 }
 0x1b7   : > { %v1519_v57 = vand.u32 4294901760, %v1518_v7  ;;  %v299_v16 = vmul.f32 %v3709_v27, %v3709_v27 }
 0x1b8   : > { %1287 = vmatpush.msrb.mxu2 %v1204_v12  ;;  %1207 = vmatpush.msrb.mxu3 %v1206_v21  ;;  %v1368_v33 = vsub.f32 %v1155_v58, %v3838_v2  ;;  %v1511_v48 = vand.u32 4294901760, %v3848_v35  ;;  %v1525_v58 = vand.u32 4294901760, %v1486_v8 }
 0x1b9   : > { %v1123_v61 = vpop.f32.mrf.mxu0  ;;  %v1520_v17 = vsub.f32 %v1518_v7, %v1519_v57  ;;  %v1489_v27 = vsel %vm311_vm0, %v299_v16, 0 }
 0x1ba   : > { %1291 = vmatpush.msrb.mxu2 %v1210_v0  ;;  %v1124_v63 = vadd.f32 %v1123_v61, %v1085_v23  ;;  %1213 = vmatpush.msrb.mxu3 %v1212_v29  ;;  %v1158_v31 = vpop.f32.mrf.mxu1  ;;  %v1369_v6 = vand.u32 4294901760, %v1368_v33  ;;  %v1512_v53 = vsub.f32 %v3848_v35, %v1511_v48  ;;  %v1526_v18 = vsub.f32 %v1486_v8, %v1525_v58 }
 0x1bb   : > { %1215 = vmatmul.f32.vlgmr.msrb.gmra.mxu3 %v3721_v55  ;;  %1241 = vmatmul.f32.vlgmr.msra.gmra.mxu2 %v3725_v62  ;;  %v1521_v19 = vand.u32 4294901760, %v1520_v17  ;;  %v1533_v21 = vand.u32 4294901760, %v1489_v27 }
 0x1bc   : > { %v1159_v34 = vadd.f32 %v1158_v31, %v1124_v63  ;;  %1260 = vmatpush.msra.mxu3 %v1175_v47  ;;  %v1513_v13 = vand.u32 4294901760, %v1512_v53  ;;  %v1527_v20 = vand.u32 4294901760, %v1526_v18 }
 0x1be   : > { %v1334_v37 = vand.u32 4294901760, %v1159_v34  ;;  %1262 = vmatpush.msra.mxu3 %v1177_v28  ;;  %v1528_v23 = vsub.f32 %v1526_v18, %v1527_v20 }
 0x1c0   : > { %1312 = vmatpush.msrb.mxu3 %v1175_v47  ;;  %v1362_v39 = vsub.f32 %v1159_v34, %v1334_v37  ;;  %1335 = vmatpush.msra.mxu2 %v1334_v37  ;;  %v1529_v29 = vand.u32 4294901760, %v1528_v23 }
 0x1c1   : > { %1419 = vmatpush.msrb.mxu1 %v1334_v37 }
 0x1c2   : > { %1314 = vmatpush.msrb.mxu3 %v1177_v28  ;;  %1337 = vmatpush.msra.mxu2 %v3838_v2  ;;  %v1363_v0 = vand.u32 4294901760, %v1362_v39  ;;  %v1370_v28 = vsub.f32 %v1368_v33, %v1369_v6 }
 0x1c3   : > { %1394 = vmatpush.msrb.mxu0 %v1362_v39  ;;  %1421 = vmatpush.msrb.mxu1 %v3838_v2 }
 0x1c4   : > { %1266 = vmatmul.f32.vlgmr.msra.gmra.mxu3 %v3728_v5  ;;  %1293 = vmatmul.f32.vlgmr.msrb.gmra.mxu2 %v3721_v55  ;;  %v1364_v47 = vsub.f32 %v1362_v39, %v1363_v0  ;;  %v1371_v12 = vand.u32 4294901760, %v1370_v28 }
 0x1c5   : > { %1397 = vmatpush.msrb.mxu0 %v1368_v33  ;;  %1446 = vmatpush.msrb.mxu2 %v1363_v0 }
 0x1c6   : > { %1400 = vmatmul.f32.vlgmr.msrb.gmra.mxu0 %v3725_v62  ;;  %1425 = vmatmul.f32.vlgmr.msrb.gmra.mxu1 %v3728_v5  ;;  %v1365_v9 = vand.u32 4294901760, %v1364_v47 }
 0x1c7   : > { %1506 = vmatpush.msra.mxu0 %v3664_v3  ;;  %1450 = vmatpush.msrb.mxu2 %v1369_v6 }
 0x1c8   : > { %1561 = vmatpush.msra.mxu1 %v3703_v24  ;;  %1366 = vmatpush.msra.mxu3 %v1365_v9 }
 0x1c9   : > { %1508 = vmatpush.msra.mxu0 %v3666_v4 }
 0x1ca   : > { %1567 = vmatpush.msra.mxu1 %v3705_v25  ;;  %1372 = vmatpush.msra.mxu3 %v1371_v12 }
 0x1cb   : > { %1686 = vmatpush.msrb.mxu0 %v3689_v14 }
 0x1cc   : > { %1723 = vmatpush.msrb.mxu1 %v3664_v3  ;;  %1316 = vmatmul.f32.vlgmr.msrb.gmra.mxu3 %v3721_v55 }
 0x1cd   : > { %1690 = vmatpush.msrb.mxu0 %v3692_v15  ;;  %1343 = vmatmul.f32.vlgmr.msra.gmra.mxu2 %v3732_v26 }
 0x1ce   : > { %1471 = vmatpush.msrb.mxu3 %v1334_v37  ;;  %1514 = vmatmul.f32.vlgmr.msra.gmra.mxu0 %v1513_v13 }
 0x1cf   : > { %1601 = vmatpush.msra.mxu2 %v3679_v10  ;;  %1569 = vmatmul.f32.vlgmr.msra.gmra.mxu1 %v3840_v30 }
 0x1d0   : > { %1473 = vmatpush.msrb.mxu3 %v3838_v2  ;;  %1725 = vmatpush.msrb.mxu1 %v3666_v4  ;;  %v1534_v2 = vsub.f32 %v1489_v27, %v1533_v21 }
 0x1d1   : > { %1604 = vmatpush.msra.mxu2 %v3683_v11 }
 0x1d2   : > { %v1535_v61 = vand.u32 4294901760, %v1534_v2 }
 0x1d4   : > { %1374 = vmatmul.f32.vlgmr.msra.gmra.mxu3 %v3721_v55  ;;  %v1536_v63 = vsub.f32 %v1534_v2, %v1535_v61 }
 0x1d5   : > { %1452 = vmatmul.f32.vlgmr.msrb.gmra.mxu2 %v3721_v55  ;;  %1641 = vmatpush.msra.mxu3 %v3664_v3 }
 0x1d6   : > { %1522 = vmatmul.f32.gmra.mxu0 %v1521_v19  ;;  %v1537_v31 = vand.u32 4294901760, %v1536_v63 }
 0x1d7   : > { %1573 = vmatmul.f32.gmra.mxu1 %v3852_v60  ;;  %1643 = vmatpush.msra.mxu3 %v3666_v4 }
 0x1dc   : > { %1475 = vmatmul.f32.vlgmr.msrb.gmra.mxu3 %v3721_v55 }
 0x1dd   : > { %1607 = vmatmul.f32.vlgmr.msra.gmra.mxu2 %v3848_v35 }
 0x1de   : > { %1530 = vmatmul.f32.gmra.mxu0 %v1529_v29 }
 0x1df   : > { %1577 = vmatmul.f32.gmra.mxu1 %v1525_v58 }
 0x1e4   : > { %1647 = vmatmul.f32.vlgmr.msra.gmra.mxu3 %v1511_v48 }
 0x1e5   : > { %1612 = vmatmul.f32.gmra.mxu2 %v1518_v7 }
 0x1e6   : > { %1538 = vmatmul.f32.gmra.mxu0 %v1537_v31 }
 0x1e7   : > { %1581 = vmatmul.f32.gmra.mxu1 %v1533_v21 }
 0x1ec   : > { %1653 = vmatmul.f32.gmra.mxu3 %v1519_v57 }
 0x1ed   : > { %1617 = vmatmul.f32.gmra.mxu2 %v1526_v18 }
 0x1ee   : > { %1692 = vmatmul.f32.vlgmr.msrb.gmra.mxu0 %v3840_v30 }
 0x1ef   : > { %1727 = vmatmul.f32.vlgmr.msrb.gmra.mxu1 %v3840_v30 }
 0x1f4   : > { %1659 = vmatmul.f32.gmra.mxu3 %v1527_v20 }
 0x1f5   : > { %1622 = vmatmul.f32.gmra.mxu2 %v1534_v2 }
 0x1f6   : > { %1696 = vmatmul.f32.gmra.mxu0 %v3852_v60 }
 0x1f7   : > { %1731 = vmatmul.f32.gmra.mxu1 %v3852_v60 }
 0x1fc   : > { %1665 = vmatmul.f32.gmra.mxu3 %v1535_v61 }
 0x1fe   : > { %1700 = vmatmul.f32.gmra.mxu0 %v1525_v58 }
 0x1ff   : > { %1735 = vmatmul.f32.gmra.mxu1 %v1525_v58 }
 0x206   : > { %1704 = vmatmul.f32.gmra.mxu0 %v1533_v21 }
 0x207   : > { %1739 = vmatmul.f32.gmra.mxu1 %v1533_v21 }
 0x236   : > { %v3897_v32 = vpop.f32.mrf.mxu2 }
 0x23e   : > { %v3899_v33 = vpop.f32.mrf.mxu3  ;;  %v3901_v34 = vpop.f32.mrf.mxu2 }
 0x243   : > { %v3903_v35 = vpop.f32.mrf.mxu0  ;;  %v3905_v30 = vpop.f32.mrf.mxu1 }
 0x244   : > { %4166 = vst [vmem:[#allocation10_spill] sm:$0xff] %v3905_v30 }
 0x247   : > { %v3907_v37 = vpop.f32.mrf.mxu3  ;;  %v3909_v38 = vpop.f32.mrf.mxu2 }
 0x24b   : > { %v1515_v39 = vpop.f32.mrf.mxu0 }
 0x24c   : > { %v1570_v6 = vpop.f32.mrf.mxu1 }
 0x24d   : > { %v1571_v57 = vadd.f32 %v1570_v6, %v1515_v39 }
 0x24f   : > { %v3911_v48 = vpop.f32.mrf.mxu3 }
 0x250   : > { %v3913_v60 = vpop.f32.mrf.mxu2 }
 0x253   : > { %v1523_v0 = vpop.f32.mrf.mxu0 }
 0x254   : > { %v1574_v52 = vpop.f32.mrf.mxu1 }
 0x255   : > { %v1575_v21 = vadd.f32 %v1574_v52, %v1523_v0  ;;  %v300_v52 = vmul.f32 %v3740_v36, %v3740_v36 }
 0x257   : > { %v3915_v47 = vpop.f32.mrf.mxu3 }
 0x258   : > { %v3917_v28 = vpop.f32.mrf.mxu2 }
 0x259   : > { %4167 = vst [vmem:[#allocation11_spill] sm:$0xff] %v3917_v28 }
 0x25b   : > { %v1531_v53 = vpop.f32.mrf.mxu0 }
 0x25c   : > { %v1578_v7 = vpop.f32.mrf.mxu1 }
 0x25d   : > { %v1579_v56 = vadd.f32 %v1578_v7, %v1531_v53 }
 0x25f   : > { %v3919_v9 = vpop.f32.mrf.mxu3 }
 0x260   : > { %4168 = vst [vmem:[#allocation12_spill] sm:$0xff] %v3919_v9  ;;  %v1608_v8 = vpop.f32.mrf.mxu2 }
 0x261   : > { %v1609_v16 = vadd.f32 %v1608_v8, %v1571_v57 }
 0x263   : > { %v1539_v12 = vpop.f32.mrf.mxu0 }
 0x264   : > { %v1582_v13 = vpop.f32.mrf.mxu1 }
 0x265   : > { %v1583_v53 = vadd.f32 %v1582_v13, %v1539_v12 }
 0x267   : > { %v1648_v58 = vpop.f32.mrf.mxu3 }
 0x268   : > { %v1613_v17 = vpop.f32.mrf.mxu2  ;;  %v1649_v18 = vadd.f32 %v1648_v58, %v1609_v16 }
 0x269   : > { %v1614_v29 = vadd.f32 %v1613_v17, %v1575_v21 }
 0x26b   : > { %v1693_v27 = vpop.f32.mrf.mxu0 }
 0x26c   : > { %v1694_v19 = vadd.f32 %v1693_v27, %v1649_v18  ;;  %v1728_v20 = vpop.f32.mrf.mxu1 }
 0x26e   : > { %v1729_v23 = vadd.f32 %v1728_v20, %v1694_v19  ;;  %v2062_v20 = vsel %vm311_vm0, %v300_v52, 0 }
 0x26f   : > { %v1654_v2 = vpop.f32.mrf.mxu3 }
 0x270   : > { %v1759_v61 = vand.u32 4294901760, %v1729_v23  ;;  %v1655_v63 = vadd.f32 %v1654_v2, %v1614_v29  ;;  %v1618_v31 = vpop.f32.mrf.mxu2 }
 0x271   : > { %v1619_v8 = vadd.f32 %v1618_v31, %v1579_v56 }
 0x272   : > { %v1791_v30 = vsub.f32 %v1729_v23, %v1759_v61 }
 0x273   : > { %v1697_v59 = vpop.f32.mrf.mxu0 }
 0x274   : > { %v1698_v9 = vadd.f32 %v1697_v59, %v1655_v63  ;;  %v1732_v28 = vpop.f32.mrf.mxu1  ;;  %v1792_v18 = vand.u32 4294901760, %v1791_v30  ;;  %v3927_v63 = vand.u32 4294901760, %v2062_v20 }
 0x276   : > { %v1733_v39 = vadd.f32 %v1732_v28, %v1698_v9  ;;  %v1793_v56 = vsub.f32 %v1791_v30, %v1792_v18 }
 0x277   : > { %v1660_v6 = vpop.f32.mrf.mxu3 }
 0x278   : > { %v1757_v57 = vand.u32 4294901760, %v1733_v39  ;;  %v1661_v16 = vadd.f32 %v1660_v6, %v1619_v8  ;;  %v1623_v59 = vpop.f32.mrf.mxu2  ;;  %v1794_v29 = vand.u32 4294901760, %v1793_v56  ;;  %v3935_v8 = vsub.f32 %v2062_v20, %v3927_v63 }
 0x279   : > { %v1624_v21 = vadd.f32 %v1623_v59, %v1583_v53  ;;  %v303_v20 = vmul.f32 %v3785_v22, %v3785_v22 }
 0x27a   : > { %v1785_v58 = vsub.f32 %v1733_v39, %v1757_v57  ;;  %1758 = vmatpush.msrb.mxu2 %v1757_v57  ;;  %v301_v39 = vmul.f32 %v3750_v51, %v3750_v51 }
 0x27b   : > { %v1701_v0 = vpop.f32.mrf.mxu0  ;;  %v2071_v22 = vsel %vm311_vm0, %v303_v20, 0 }
 0x27c   : > { %v1786_v17 = vand.u32 4294901760, %v1785_v58  ;;  %v1702_v27 = vadd.f32 %v1701_v0, %v1661_v16  ;;  %1760 = vmatpush.msrb.mxu2 %v1759_v61  ;;  %v1736_v19 = vpop.f32.mrf.mxu1  ;;  %v2065_v16 = vsel %vm311_vm0, %v301_v39, 0  ;;  %v2093_v0 = vand.u32 4294901760, %v3935_v8 }
 0x27d   : > { %1766 = vmatmul.f32.vlgmr.msrb.gmra.mxu2 %v3732_v26  ;;  %v3939_v52 = vand.u32 4294901760, %v2065_v16 }
 0x27e   : > { %v1787_v28 = vsub.f32 %v1785_v58, %v1786_v17  ;;  %v1737_v7 = vadd.f32 %v1736_v19, %v1702_v27  ;;  %1817 = vmatpush.msra.mxu2 %v1785_v58  ;;  %v302_v27 = vmul.f32 %v3765_v1, %v3765_v1  ;;  %v2094_v19 = vsub.f32 %v3935_v8, %v2093_v0 }
 0x27f   : > { %v1666_v9 = vpop.f32.mrf.mxu3  ;;  %v2100_v59 = vsub.f32 %v2065_v16, %v3939_v52 }
 0x280   : > { %1820 = vmatpush.msra.mxu2 %v1791_v30  ;;  %v1788_v23 = vand.u32 4294901760, %v1787_v28  ;;  %v3925_v36 = vand.u32 4294901760, %v1737_v7  ;;  %v1667_v2 = vadd.f32 %v1666_v9, %v1624_v21  ;;  %v2068_v53 = vsel %vm311_vm0, %v302_v27, 0 }
 0x281   : > { %v2101_v56 = vand.u32 4294901760, %v2100_v59  ;;  %v2107_v9 = vand.u32 4294901760, %v2068_v53 }
 0x282   : > { %1869 = vmatpush.msrb.mxu2 %v1786_v17  ;;  %1789 = vmatpush.msrb.mxu3 %v1788_v23  ;;  %v1950_v30 = vsub.f32 %v1737_v7, %v3925_v36  ;;  %v2095_v7 = vand.u32 4294901760, %v2094_v19 }
 0x283   : > { %v1705_v12 = vpop.f32.mrf.mxu0  ;;  %v2102_v21 = vsub.f32 %v2100_v59, %v2101_v56  ;;  %v2108_v23 = vsub.f32 %v2068_v53, %v2107_v9 }
 0x284   : > { %1873 = vmatpush.msrb.mxu2 %v1792_v18  ;;  %v1706_v13 = vadd.f32 %v1705_v12, %v1667_v2  ;;  %1795 = vmatpush.msrb.mxu3 %v1794_v29  ;;  %v1740_v31 = vpop.f32.mrf.mxu1  ;;  %v1951_v51 = vand.u32 4294901760, %v1950_v30  ;;  %v2115_v12 = vand.u32 4294901760, %v2071_v22 }
 0x285   : > { %1797 = vmatmul.f32.vlgmr.msrb.gmra.mxu3 %v3721_v55  ;;  %1823 = vmatmul.f32.vlgmr.msra.gmra.mxu2 %v3725_v62  ;;  %v2103_v2 = vand.u32 4294901760, %v2102_v21  ;;  %v2109_v29 = vand.u32 4294901760, %v2108_v23 }
 0x286   : > { %v1741_v6 = vadd.f32 %v1740_v31, %v1706_v13  ;;  %1842 = vmatpush.msra.mxu3 %v1757_v57 }
 0x287   : > { %v2110_v13 = vsub.f32 %v2108_v23, %v2109_v29 }
 0x288   : > { %v1916_v58 = vand.u32 4294901760, %v1741_v6  ;;  %1844 = vmatpush.msra.mxu3 %v1759_v61 }
 0x289   : > { %v2111_v31 = vand.u32 4294901760, %v2110_v13 }
 0x28a   : > { %1894 = vmatpush.msrb.mxu3 %v1757_v57  ;;  %v1944_v18 = vsub.f32 %v1741_v6, %v1916_v58  ;;  %1917 = vmatpush.msra.mxu2 %v1916_v58 }
 0x28b   : > { %2001 = vmatpush.msra.mxu1 %v1916_v58 }
 0x28c   : > { %1896 = vmatpush.msrb.mxu3 %v1759_v61  ;;  %v1945_v17 = vand.u32 4294901760, %v1944_v18  ;;  %1919 = vmatpush.msra.mxu2 %v3925_v36  ;;  %v1952_v61 = vsub.f32 %v1950_v30, %v1951_v51 }
 0x28d   : > { %1976 = vmatpush.msra.mxu0 %v1944_v18  ;;  %2003 = vmatpush.msra.mxu1 %v3925_v36 }
 0x28e   : > { %1848 = vmatmul.f32.vlgmr.msra.gmra.mxu3 %v3728_v5  ;;  %v1946_v57 = vsub.f32 %v1944_v18, %v1945_v17  ;;  %1875 = vmatmul.f32.vlgmr.msrb.gmra.mxu2 %v3721_v55  ;;  %v1953_v28 = vand.u32 4294901760, %v1952_v61 }
 0x28f   : > { %1979 = vmatpush.msra.mxu0 %v1950_v30  ;;  %2028 = vmatpush.msrb.mxu2 %v1945_v17 }
 0x290   : > { %1982 = vmatmul.f32.vlgmr.msra.gmra.mxu0 %v3725_v62  ;;  %2007 = vmatmul.f32.vlgmr.msra.gmra.mxu1 %v3728_v5  ;;  %v1947_v1 = vand.u32 4294901760, %v1946_v57 }
 0x291   : > { %2088 = vmatpush.msrb.mxu0 %v3664_v3  ;;  %2032 = vmatpush.msrb.mxu2 %v1951_v51 }
 0x292   : > { %2143 = vmatpush.msrb.mxu1 %v3703_v24  ;;  %1948 = vmatpush.msra.mxu3 %v1947_v1 }
 0x293   : > { %2090 = vmatpush.msrb.mxu0 %v3666_v4 }
 0x294   : > { %2149 = vmatpush.msrb.mxu1 %v3705_v25  ;;  %1954 = vmatpush.msra.mxu3 %v1953_v28 }
 0x295   : > { %2268 = vmatpush.msra.mxu0 %v3689_v14 }
 0x296   : > { %2305 = vmatpush.msra.mxu1 %v3664_v3  ;;  %1898 = vmatmul.f32.vlgmr.msrb.gmra.mxu3 %v3721_v55 }
 0x297   : > { %2272 = vmatpush.msra.mxu0 %v3692_v15  ;;  %1925 = vmatmul.f32.vlgmr.msra.gmra.mxu2 %v3732_v26 }
 0x298   : > { %2053 = vmatpush.msrb.mxu3 %v1916_v58  ;;  %2096 = vmatmul.f32.vlgmr.msrb.gmra.mxu0 %v2095_v7 }
 0x299   : > { %2183 = vmatpush.msra.mxu2 %v3679_v10  ;;  %2151 = vmatmul.f32.vlgmr.msrb.gmra.mxu1 %v3927_v63 }
 0x29a   : > { %2055 = vmatpush.msrb.mxu3 %v3925_v36  ;;  %2307 = vmatpush.msra.mxu1 %v3666_v4  ;;  %v2116_v36 = vsub.f32 %v2071_v22, %v2115_v12 }
 0x29b   : > { %2186 = vmatpush.msra.mxu2 %v3683_v11 }
 0x29c   : > { %v2117_v39 = vand.u32 4294901760, %v2116_v36 }
 0x29e   : > { %1956 = vmatmul.f32.vlgmr.msra.gmra.mxu3 %v3721_v55  ;;  %v2118_v30 = vsub.f32 %v2116_v36, %v2117_v39 }
 0x29f   : > { %2034 = vmatmul.f32.vlgmr.msrb.gmra.mxu2 %v3721_v55  ;;  %2223 = vmatpush.msra.mxu3 %v3664_v3 }
 0x2a0   : > { %2104 = vmatmul.f32.gmra.mxu0 %v2103_v2  ;;  %v2119_v6 = vand.u32 4294901760, %v2118_v30 }
 0x2a1   : > { %2155 = vmatmul.f32.gmra.mxu1 %v3939_v52  ;;  %2225 = vmatpush.msra.mxu3 %v3666_v4 }
 0x2a6   : > { %2057 = vmatmul.f32.vlgmr.msrb.gmra.mxu3 %v3721_v55 }
 0x2a7   : > { %2189 = vmatmul.f32.vlgmr.msra.gmra.mxu2 %v3935_v8 }
 0x2a8   : > { %2112 = vmatmul.f32.gmra.mxu0 %v2111_v31 }
 0x2a9   : > { %2159 = vmatmul.f32.gmra.mxu1 %v2107_v9 }
 0x2ae   : > { %2229 = vmatmul.f32.vlgmr.msra.gmra.mxu3 %v2093_v0 }
 0x2af   : > { %2194 = vmatmul.f32.gmra.mxu2 %v2100_v59 }
 0x2b0   : > { %2120 = vmatmul.f32.gmra.mxu0 %v2119_v6 }
 0x2b1   : > { %2163 = vmatmul.f32.gmra.mxu1 %v2115_v12 }
 0x2b6   : > { %2235 = vmatmul.f32.gmra.mxu3 %v2101_v56 }
 0x2b7   : > { %2199 = vmatmul.f32.gmra.mxu2 %v2108_v23 }
 0x2b8   : > { %2274 = vmatmul.f32.vlgmr.msra.gmra.mxu0 %v3927_v63 }
 0x2b9   : > { %2309 = vmatmul.f32.vlgmr.msra.gmra.mxu1 %v3927_v63 }
 0x2be   : > { %2241 = vmatmul.f32.gmra.mxu3 %v2109_v29 }
 0x2bf   : > { %2204 = vmatmul.f32.gmra.mxu2 %v2116_v36 }
 0x2c0   : > { %2278 = vmatmul.f32.gmra.mxu0 %v3939_v52 }
 0x2c1   : > { %2313 = vmatmul.f32.gmra.mxu1 %v3939_v52 }
 0x2c6   : > { %2247 = vmatmul.f32.gmra.mxu3 %v2117_v39 }
 0x2c8   : > { %2282 = vmatmul.f32.gmra.mxu0 %v2107_v9 }
 0x2c9   : > { %2317 = vmatmul.f32.gmra.mxu1 %v2107_v9 }
 0x2d0   : > { %2286 = vmatmul.f32.gmra.mxu0 %v2115_v12 }
 0x2d1   : > { %2321 = vmatmul.f32.gmra.mxu1 %v2115_v12 }
 0x300   : > { %v1767_v8 = vpop.f32.mrf.mxu2 }
 0x308   : > { %v1798_v58 = vpop.f32.mrf.mxu3  ;;  %v1824_v16 = vpop.f32.mrf.mxu2 }
 0x309   : > { %v1799_v18 = vadd.f32 %v1798_v58, %v1767_v8 }
 0x30b   : > { %v1825_v51 = vadd.f32 %v1824_v16, %v1799_v18 }
 0x30d   : > { %v1983_v0 = vpop.f32.mrf.mxu0  ;;  %v2008_v17 = vpop.f32.mrf.mxu1 }
 0x311   : > { %v1849_v27 = vpop.f32.mrf.mxu3  ;;  %v1876_v57 = vpop.f32.mrf.mxu2 }
 0x312   : > { %v1850_v63 = vadd.f32 %v1849_v27, %v1825_v51 }
 0x314   : > { %v1877_v61 = vadd.f32 %v1876_v57, %v1850_v63 }
 0x315   : > { %v2097_v19 = vpop.f32.mrf.mxu0 }
 0x316   : > { %v2152_v59 = vpop.f32.mrf.mxu1 }
 0x317   : > { %v2153_v30 = vadd.f32 %v2152_v59, %v2097_v19 }
 0x319   : > { %v1899_v1 = vpop.f32.mrf.mxu3 }
 0x31a   : > { %v3984_v52 = vadd.f32 %v1899_v1, %v1877_v61  ;;  %v1926_v53 = vpop.f32.mrf.mxu2 }
 0x31d   : > { %v2105_v28 = vpop.f32.mrf.mxu0 }
 0x31e   : > { %v2156_v7 = vpop.f32.mrf.mxu1 }
 0x31f   : > { %v2157_v63 = vadd.f32 %v2156_v7, %v2105_v28 }
 0x321   : > { %v1957_v56 = vpop.f32.mrf.mxu3 }
 0x322   : > { %v1958_v9 = vadd.f32 %v1957_v56, %v1926_v53  ;;  %v2035_v20 = vpop.f32.mrf.mxu2 }
 0x324   : > { %v1984_v21 = vadd.f32 %v1983_v0, %v1958_v9 }
 0x325   : > { %v2113_v23 = vpop.f32.mrf.mxu0 }
 0x326   : > { %v2009_v22 = vadd.f32 %v2008_v17, %v1984_v21  ;;  %v2160_v2 = vpop.f32.mrf.mxu1 }
 0x327   : > { %v2161_v59 = vadd.f32 %v2160_v2, %v2113_v23 }
 0x328   : > { %v2036_v29 = vadd.f32 %v2035_v20, %v2009_v22 }
 0x329   : > { %v2058_v12 = vpop.f32.mrf.mxu3 }
 0x32a   : > { %v3986_v13 = vadd.f32 %v2058_v12, %v2036_v29  ;;  %v2190_v36 = vpop.f32.mrf.mxu2 }
 0x32b   : > { %v2191_v8 = vadd.f32 %v2190_v36, %v2153_v30 }
 0x32d   : > { %v2121_v31 = vpop.f32.mrf.mxu0 }
 0x32e   : > { %v2164_v39 = vpop.f32.mrf.mxu1 }
 0x32f   : > { %v2165_v2 = vadd.f32 %v2164_v39, %v2121_v31  ;;  %v3454_v39 = vld [vmem:[%s3649_s14 + $0x8] sm:$0xff] }
 0x331   : > { %v2230_v6 = vpop.f32.mrf.mxu3 }
 0x332   : > { %v2195_v58 = vpop.f32.mrf.mxu2  ;;  %v2231_v16 = vadd.f32 %v2230_v6, %v2191_v8  ;;  %v3452_v6 = vld [vmem:[%s3649_s14] sm:$0xff] }
 0x333   : > { %v2196_v17 = vadd.f32 %v2195_v58, %v2157_v63  ;;  %v3453_v8 = vld [vmem:[%s3737_s21] sm:$0xff] }
 0x334   : > { %v304_v58 = vmul.f32 %v3453_v8, %v3452_v6 }
 0x335   : > { %v2275_v18 = vpop.f32.mrf.mxu0 }
 0x336   : > { %v2276_v51 = vadd.f32 %v2275_v18, %v2231_v16  ;;  %v2310_v27 = vpop.f32.mrf.mxu1 }
 0x338   : > { %v2311_v0 = vadd.f32 %v2310_v27, %v2276_v51 }
 0x339   : > { %v2236_v57 = vpop.f32.mrf.mxu3 }
 0x33a   : > { %v3988_v61 = vand.u32 4294901760, %v2311_v0  ;;  %v2237_v1 = vadd.f32 %v2236_v57, %v2196_v17  ;;  %v2200_v53 = vpop.f32.mrf.mxu2  ;;  %v2644_v17 = vsel %vm311_vm0, %v304_v58, 0 }
 0x33b   : > { %v2201_v29 = vadd.f32 %v2200_v53, %v2161_v59  ;;  %v3998_v59 = vand.u32 4294901760, %v2644_v17 }
 0x33c   : > { %v2373_v20 = vsub.f32 %v2311_v0, %v3988_v61 }
 0x33d   : > { %v2279_v56 = vpop.f32.mrf.mxu0 }
 0x33e   : > { %v2280_v9 = vadd.f32 %v2279_v56, %v2237_v1  ;;  %v2314_v19 = vpop.f32.mrf.mxu1  ;;  %v2374_v36 = vand.u32 4294901760, %v2373_v20 }
 0x340   : > { %v2315_v21 = vadd.f32 %v2314_v19, %v2280_v9  ;;  %v2375_v0 = vsub.f32 %v2373_v20, %v2374_v36 }
 0x341   : > { %v2242_v22 = vpop.f32.mrf.mxu3 }
 0x342   : > { %v2339_v12 = vand.u32 4294901760, %v2315_v21  ;;  %v2243_v7 = vadd.f32 %v2242_v22, %v2201_v29  ;;  %v2205_v23 = vpop.f32.mrf.mxu2  ;;  %v2376_v19 = vand.u32 4294901760, %v2375_v0 }
 0x343   : > { %v2206_v1 = vadd.f32 %v2205_v23, %v2165_v2  ;;  %v3457_v23 = vld [vmem:[%s3737_s21 + $0x10] sm:$0xff] }
 0x344   : > { %v2367_v28 = vsub.f32 %v2315_v21, %v2339_v12  ;;  %2340 = vmatpush.msrb.mxu2 %v2339_v12  ;;  %v3455_v21 = vld [vmem:[%s3737_s21 + $0x8] sm:$0xff] }
 0x345   : > { %v2283_v30 = vpop.f32.mrf.mxu0  ;;  %v305_v22 = vmul.f32 %v3455_v21, %v3454_v39  ;;  %v3459_v39 = vld [vmem:[%s3737_s21 + $0x18] sm:$0xff] }
 0x346   : > { %v2368_v16 = vand.u32 4294901760, %v2367_v28  ;;  %v2284_v18 = vadd.f32 %v2283_v30, %v2243_v7  ;;  %2342 = vmatpush.msrb.mxu2 %v3988_v61  ;;  %v2318_v51 = vpop.f32.mrf.mxu1  ;;  %v4006_v30 = vsub.f32 %v2644_v17, %v3998_v59 }
 0x347   : > { %2348 = vmatmul.f32.vlgmr.msrb.gmra.mxu2 %v3732_v26  ;;  %v2647_v6 = vsel %vm311_vm0, %v305_v22, 0 }
 0x348   : > { %v2369_v27 = vsub.f32 %v2367_v28, %v2368_v16  ;;  %v2319_v63 = vadd.f32 %v2318_v51, %v2284_v18  ;;  %2399 = vmatpush.msra.mxu2 %v2367_v28  ;;  %v4012_v18 = vand.u32 4294901760, %v2647_v6  ;;  %v3456_v51 = vld [vmem:[%s3649_s14 + $0x10] sm:$0xff] }
 0x349   : > { %v2248_v57 = vpop.f32.mrf.mxu3  ;;  %v306_v2 = vmul.f32 %v3457_v23, %v3456_v51 }
 0x34a   : > { %2402 = vmatpush.msra.mxu2 %v2373_v20  ;;  %v2370_v53 = vand.u32 4294901760, %v2369_v27  ;;  %v3996_v56 = vand.u32 4294901760, %v2319_v63  ;;  %v2249_v9 = vadd.f32 %v2248_v57, %v2206_v1  ;;  %v2682_v0 = vsub.f32 %v2647_v6, %v4012_v18 }
 0x34b   : > { %v2650_v17 = vsel %vm311_vm0, %v306_v2, 0 }
 0x34c   : > { %2451 = vmatpush.msrb.mxu2 %v2368_v16  ;;  %2371 = vmatpush.msrb.mxu3 %v2370_v53  ;;  %v2532_v20 = vsub.f32 %v2319_v63, %v3996_v56  ;;  %v2675_v16 = vand.u32 4294901760, %v4006_v30 }
 0x34d   : > { %v2287_v31 = vpop.f32.mrf.mxu0 }
 0x34e   : > { %2455 = vmatpush.msrb.mxu2 %v2374_v36  ;;  %v2288_v29 = vadd.f32 %v2287_v31, %v2249_v9  ;;  %2377 = vmatpush.msrb.mxu3 %v2376_v19  ;;  %v2322_v28 = vpop.f32.mrf.mxu1  ;;  %v2533_v58 = vand.u32 4294901760, %v2532_v20  ;;  %v2676_v63 = vsub.f32 %v4006_v30, %v2675_v16  ;;  %v2683_v9 = vand.u32 4294901760, %v2682_v0  ;;  %v3458_v31 = vld [vmem:[%s3649_s14 + $0x18] sm:$0xff] }
 0x34f   : > { %2379 = vmatmul.f32.vlgmr.msrb.gmra.mxu3 %v3721_v55  ;;  %2405 = vmatmul.f32.vlgmr.msra.gmra.mxu2 %v3725_v62  ;;  %v2689_v19 = vand.u32 4294901760, %v2650_v17  ;;  %v307_v21 = vmul.f32 %v3459_v39, %v3458_v31  ;;  %v4170_v31 = vld [vmem:[#allocation8_spill] sm:$0xff] }
 0x350   : > { %v2323_v7 = vadd.f32 %v2322_v28, %v2288_v29  ;;  %2424 = vmatpush.msra.mxu3 %v2339_v12  ;;  %v2677_v53 = vand.u32 4294901760, %v2676_v63 }
 0x352   : > { %v2498_v36 = vand.u32 4294901760, %v2323_v7  ;;  %2426 = vmatpush.msra.mxu3 %v3988_v61 }
 0x354   : > { %2476 = vmatpush.msrb.mxu3 %v2339_v12  ;;  %v2526_v8 = vsub.f32 %v2323_v7, %v2498_v36  ;;  %2499 = vmatpush.msra.mxu2 %v2498_v36 }
 0x355   : > { %2583 = vmatpush.msrb.mxu1 %v2498_v36 }
 0x356   : > { %2478 = vmatpush.msrb.mxu3 %v3988_v61  ;;  %v2527_v27 = vand.u32 4294901760, %v2526_v8  ;;  %2501 = vmatpush.msra.mxu2 %v3996_v56  ;;  %v2534_v61 = vsub.f32 %v2532_v20, %v2533_v58 }
 0x357   : > { %2558 = vmatpush.msrb.mxu0 %v2526_v8  ;;  %2585 = vmatpush.msrb.mxu1 %v3996_v56 }
 0x358   : > { %2430 = vmatmul.f32.vlgmr.msra.gmra.mxu3 %v3728_v5  ;;  %v2528_v12 = vsub.f32 %v2526_v8, %v2527_v27  ;;  %2457 = vmatmul.f32.vlgmr.msrb.gmra.mxu2 %v3721_v55  ;;  %v2535_v1 = vand.u32 4294901760, %v2534_v61 }
 0x359   : > { %2561 = vmatpush.msrb.mxu0 %v2532_v20  ;;  %2610 = vmatpush.msrb.mxu2 %v2527_v27 }
 0x35a   : > { %2564 = vmatmul.f32.vlgmr.msrb.gmra.mxu0 %v3725_v62  ;;  %2589 = vmatmul.f32.vlgmr.msrb.gmra.mxu1 %v3728_v5  ;;  %v2529_v57 = vand.u32 4294901760, %v2528_v12 }
 0x35b   : > { %2670 = vmatpush.msra.mxu0 %v3664_v3  ;;  %2614 = vmatpush.msrb.mxu2 %v2533_v58 }
 0x35c   : > { %2725 = vmatpush.msra.mxu1 %v3703_v24  ;;  %2530 = vmatpush.msra.mxu3 %v2529_v57  ;;  %v2684_v24 = vsub.f32 %v2682_v0, %v2683_v9 }
 0x35d   : > { %2672 = vmatpush.msra.mxu0 %v3666_v4 }
 0x35e   : > { %2731 = vmatpush.msra.mxu1 %v3705_v25  ;;  %2536 = vmatpush.msra.mxu3 %v2535_v1  ;;  %v2690_v25 = vsub.f32 %v2650_v17, %v2689_v19  ;;  %v2685_v22 = vand.u32 4294901760, %v2684_v24  ;;  %v4169_v1 = vld [vmem:[#allocation10_spill] sm:$0xff] }
 0x35f   : > { %2850 = vmatpush.msrb.mxu0 %v3689_v14  ;;  %v2653_v14 = vsel %vm311_vm0, %v307_v21, 0  ;;  %v4171_v21 = vld [vmem:[#allocation11_spill] sm:$0xff] }
 0x360   : > { %2887 = vmatpush.msrb.mxu1 %v3664_v3  ;;  %2480 = vmatmul.f32.vlgmr.msrb.gmra.mxu3 %v3721_v55  ;;  %v2697_v29 = vand.u32 4294901760, %v2653_v14 }
 0x361   : > { %2854 = vmatpush.msrb.mxu0 %v3692_v15  ;;  %2507 = vmatmul.f32.vlgmr.msra.gmra.mxu2 %v3732_v26  ;;  %v2691_v15 = vand.u32 4294901760, %v2690_v25 }
 0x362   : > { %2635 = vmatpush.msrb.mxu3 %v2498_v36  ;;  %2678 = vmatmul.f32.vlgmr.msra.gmra.mxu0 %v2677_v53 }
 0x363   : > { %2765 = vmatpush.msra.mxu2 %v3679_v10  ;;  %2733 = vmatmul.f32.vlgmr.msra.gmra.mxu1 %v3998_v59  ;;  %v2692_v10 = vsub.f32 %v2690_v25, %v2691_v15 }
 0x364   : > { %2637 = vmatpush.msrb.mxu3 %v3996_v56  ;;  %2889 = vmatpush.msrb.mxu1 %v3666_v4  ;;  %v2698_v56 = vsub.f32 %v2653_v14, %v2697_v29 }
 0x365   : > { %2768 = vmatpush.msra.mxu2 %v3683_v11  ;;  %v2693_v28 = vand.u32 4294901760, %v2692_v10 }
 0x366   : > { %v2699_v11 = vand.u32 4294901760, %v2698_v56 }
 0x368   : > { %2538 = vmatmul.f32.vlgmr.msra.gmra.mxu3 %v3721_v55  ;;  %v2700_v20 = vsub.f32 %v2698_v56, %v2699_v11 }
 0x369   : > { %2616 = vmatmul.f32.vlgmr.msrb.gmra.mxu2 %v3721_v55  ;;  %2805 = vmatpush.msra.mxu3 %v3664_v3 }
 0x36a   : > { %2686 = vmatmul.f32.gmra.mxu0 %v2685_v22  ;;  %v2701_v7 = vand.u32 4294901760, %v2700_v20 }
 0x36b   : > { %2737 = vmatmul.f32.gmra.mxu1 %v4012_v18  ;;  %2807 = vmatpush.msra.mxu3 %v3666_v4  ;;  %v635_v4 = vadd.f32 %v3812_v41, %v3810_v40 }
 0x36d   : > { %v661_v58 = vadd.f32 %v3814_v42, %v635_v4 }
 0x36f   : > { %v686_v23 = vadd.f32 %v3820_v45, %v661_v58  ;;  %v1376_v45 = vadd.f32 %v3915_v47, %v3913_v60 }
 0x370   : > { %2639 = vmatmul.f32.vlgmr.msrb.gmra.mxu3 %v3721_v55 }
 0x371   : > { %2771 = vmatmul.f32.vlgmr.msra.gmra.mxu2 %v4006_v30  ;;  %v713_v41 = vadd.f32 %v3822_v46, %v686_v23 }
 0x372   : > { %2694 = vmatmul.f32.gmra.mxu0 %v2693_v28 }
 0x373   : > { %2741 = vmatmul.f32.gmra.mxu1 %v2689_v19 }
 0x378   : > { %2811 = vmatmul.f32.vlgmr.msra.gmra.mxu3 %v2675_v16 }
 0x379   : > { %2776 = vmatmul.f32.gmra.mxu2 %v2682_v0 }
 0x37a   : > { %2702 = vmatmul.f32.gmra.mxu0 %v2701_v7 }
 0x37b   : > { %2745 = vmatmul.f32.gmra.mxu1 %v2697_v29 }
 0x380   : > { %2817 = vmatmul.f32.gmra.mxu3 %v2683_v9 }
 0x381   : > { %2781 = vmatmul.f32.gmra.mxu2 %v2690_v25 }
 0x382   : > { %2856 = vmatmul.f32.vlgmr.msrb.gmra.mxu0 %v3998_v59 }
 0x383   : > { %2891 = vmatmul.f32.vlgmr.msrb.gmra.mxu1 %v3998_v59  ;;  %v1217_v59 = vadd.f32 %v3899_v33, %v3897_v32  ;;  %v4068_v33 = vadd.f32 %v3824_v49, %v713_v41 }
 0x385   : > { %v4079_v46 = vmul.f32 %v4068_v33, %v4068_v33 }
 0x387   : > { %v3231_v57 = vsub.f32 %v3984_v52, %v4079_v46  ;;  %v4172_v52 = vld [vmem:[#allocation9_spill] sm:$0xff] }
 0x388   : > { %2823 = vmatmul.f32.gmra.mxu3 %v2691_v15 }
 0x389   : > { %2786 = vmatmul.f32.gmra.mxu2 %v2698_v56 }
 0x38a   : > { %2860 = vmatmul.f32.gmra.mxu0 %v4012_v18 }
 0x38b   : > { %2895 = vmatmul.f32.gmra.mxu1 %v4012_v18  ;;  %v1243_v18 = vadd.f32 %v3901_v34, %v1217_v59  ;;  %v794_v34 = vadd.f32 %v3828_v54, %v3826_v50  ;;  %v1402_v50 = vadd.f32 %v3903_v35, %v1376_v45 }
 0x38d   : > { %v1268_v2 = vadd.f32 %v3907_v37, %v1243_v18  ;;  %v820_v0 = vadd.f32 %v3816_v43, %v794_v34  ;;  %v1427_v53 = vadd.f32 %v4169_v1, %v1402_v50 }
 0x38f   : > { %v1295_v61 = vadd.f32 %v3909_v38, %v1268_v2  ;;  %v845_v17 = vadd.f32 %v3818_v44, %v820_v0  ;;  %v1454_v35 = vadd.f32 %v4171_v21, %v1427_v53 }
 0x390   : > { %2829 = vmatmul.f32.gmra.mxu3 %v2699_v11 }
 0x391   : > { %v4073_v63 = vadd.f32 %v3911_v48, %v1295_v61  ;;  %v872_v39 = vadd.f32 %v4170_v31, %v845_v17 }
 0x392   : > { %2864 = vmatmul.f32.gmra.mxu0 %v2689_v19 }
 0x393   : > { %2899 = vmatmul.f32.gmra.mxu1 %v2689_v19  ;;  %v4084_v49 = vmul.f32 %v4073_v63, %v4073_v63  ;;  %v4097_v15 = vadd.f32 %v4172_v52, %v872_v39 }
 0x395   : > { %v4104_v20 = vmul.f32 %v4097_v15, %v4097_v15 }
 0x39a   : > { %2868 = vmatmul.f32.gmra.mxu0 %v2697_v29 }
 0x39b   : > { %2903 = vmatmul.f32.gmra.mxu1 %v2697_v29  ;;  %v4173_v29 = vld [vmem:[#allocation12_spill] sm:$0xff] }
 0x39c   : > { %v4100_v10 = vadd.f32 %v4173_v29, %v1454_v35 }
 0x39e   : > { %v4108_v7 = vmul.f32 %v4100_v10, %v4100_v10 }
 0x3ca   : > { %v2349_v3 = vpop.f32.mrf.mxu2 }
 0x3d2   : > { %v2380_v30 = vpop.f32.mrf.mxu3  ;;  %v2406_v36 = vpop.f32.mrf.mxu2 }
 0x3d3   : > { %v2381_v6 = vadd.f32 %v2380_v30, %v2349_v3  ;;  %v3232_v30 = vsub.f32 %v3986_v13, %v4104_v20 }
 0x3d5   : > { %v2407_v8 = vadd.f32 %v2406_v36, %v2381_v6 }
 0x3d7   : > { %v2565_v16 = vpop.f32.mrf.mxu0  ;;  %v2590_v51 = vpop.f32.mrf.mxu1 }
 0x3db   : > { %v2431_v27 = vpop.f32.mrf.mxu3  ;;  %v2458_v40 = vpop.f32.mrf.mxu2 }
 0x3dc   : > { %v2432_v12 = vadd.f32 %v2431_v27, %v2407_v8 }
 0x3de   : > { %v2459_v32 = vadd.f32 %v2458_v40, %v2432_v12 }
 0x3df   : > { %v2679_v42 = vpop.f32.mrf.mxu0 }
 0x3e0   : > { %v2734_v37 = vpop.f32.mrf.mxu1 }
 0x3e1   : > { %v2735_v58 = vadd.f32 %v2734_v37, %v2679_v42 }
 0x3e3   : > { %v2481_v38 = vpop.f32.mrf.mxu3 }
 0x3e4   : > { %v2482_v54 = vadd.f32 %v2481_v38, %v2459_v32  ;;  %v2508_v48 = vpop.f32.mrf.mxu2 }
 0x3e6   : > { %v3233_v60 = vsub.f32 %v2482_v54, %v4084_v49 }
 0x3e7   : > { %v2687_v47 = vpop.f32.mrf.mxu0 }
 0x3e8   : > { %v4092_v9 = vadd.f32 %v3233_v60, %v3231_v57  ;;  %v2738_v43 = vpop.f32.mrf.mxu1 }
 0x3e9   : > { %v2739_v40 = vadd.f32 %v2738_v43, %v2687_v47 }
 0x3eb   : > { %v2539_v19 = vpop.f32.mrf.mxu3 }
 0x3ec   : > { %v2540_v24 = vadd.f32 %v2539_v19, %v2508_v48  ;;  %v2617_v25 = vpop.f32.mrf.mxu2 }
 0x3ee   : > { %v2566_v14 = vadd.f32 %v2565_v16, %v2540_v24 }
 0x3ef   : > { %v2695_v22 = vpop.f32.mrf.mxu0 }
 0x3f0   : > { %v2591_v44 = vadd.f32 %v2590_v51, %v2566_v14  ;;  %v2742_v56 = vpop.f32.mrf.mxu1 }
 0x3f1   : > { %v2743_v54 = vadd.f32 %v2742_v56, %v2695_v22 }
 0x3f2   : > { %v2618_v28 = vadd.f32 %v2617_v25, %v2591_v44 }
 0x3f3   : > { %v2640_v11 = vpop.f32.mrf.mxu3 }
 0x3f4   : > { %v2641_v3 = vadd.f32 %v2640_v11, %v2618_v28  ;;  %v2772_v4 = vpop.f32.mrf.mxu2 }
 0x3f5   : > { %v2773_v18 = vadd.f32 %v2772_v4, %v2735_v58 }
 0x3f6   : > { %v3234_v36 = vsub.f32 %v2641_v3, %v4108_v7 }
 0x3f7   : > { %v2703_v59 = vpop.f32.mrf.mxu0 }
 0x3f8   : > { %v4113_v6 = vadd.f32 %v3234_v36, %v3232_v30  ;;  %v2746_v8 = vpop.f32.mrf.mxu1 }
 0x3f9   : > { %v2747_v21 = vadd.f32 %v2746_v8, %v2703_v59 }
 0x3fb   : > { %v2812_v16 = vpop.f32.mrf.mxu3 }
 0x3fc   : > { %v2777_v51 = vpop.f32.mrf.mxu2  ;;  %v2813_v23 = vadd.f32 %v2812_v16, %v2773_v18 }
 0x3fd   : > { %v2778_v32 = vadd.f32 %v2777_v51, %v2739_v40 }
 0x3ff   : > { %v2857_v2 = vpop.f32.mrf.mxu0 }
 0x400   : > { %v2858_v27 = vadd.f32 %v2857_v2, %v2813_v23  ;;  %v2892_v12 = vpop.f32.mrf.mxu1 }
 0x402   : > { %v2893_v41 = vadd.f32 %v2892_v12, %v2858_v27 }
 0x403   : > { %v2818_v61 = vpop.f32.mrf.mxu3 }
 0x404   : > { %v2923_v34 = vand.u32 4294901760, %v2893_v41  ;;  %v2819_v13 = vadd.f32 %v2818_v61, %v2778_v32  ;;  %v2782_v45 = vpop.f32.mrf.mxu2  ;;  %v3249_v61 = vadd.f32 %v4084_v49, %v4079_v46  ;;  %v3229_v46 = vmul.f32 %v4073_v63, %v4068_v33 }
 0x405   : > { %v2783_v57 = vadd.f32 %v2782_v45, %v2743_v54 }
 0x406   : > { %v2955_v48 = vsub.f32 %v2893_v41, %v2923_v34  ;;  %v3244_v41 = vstv %s3388_s30 }
 0x407   : > { %v2861_v38 = vpop.f32.mrf.mxu0 }
 0x408   : > { %v2862_v0 = vadd.f32 %v2861_v38, %v2819_v13  ;;  %v2896_v50 = vpop.f32.mrf.mxu1  ;;  %v2956_v53 = vand.u32 4294901760, %v2955_v48  ;;  %v3255_v13 = vadd.f32 %v4092_v9, %v3244_v41  ;;  %v3256_v38 = vadd.f32 %v4113_v6, %v3244_v41 }
 0x40a   : > { %v2897_v42 = vadd.f32 %v2896_v50, %v2862_v0  ;;  %v2957_v25 = vsub.f32 %v2955_v48, %v2956_v53 }
 0x40b   : > { %v2824_v37 = vpop.f32.mrf.mxu3 }
 0x40c   : > { %v2921_v60 = vand.u32 4294901760, %v2897_v42  ;;  %v2825_v1 = vadd.f32 %v2824_v37, %v2783_v57  ;;  %v2787_v39 = vpop.f32.mrf.mxu2  ;;  %v2958_v56 = vand.u32 4294901760, %v2957_v25 }
 0x40d   : > { %v2788_v22 = vadd.f32 %v2787_v39, %v2747_v21 }
 0x40e   : > { %v2949_v17 = vsub.f32 %v2897_v42, %v2921_v60  ;;  %2922 = vmatpush.msrb.mxu2 %v2921_v60 }
 0x40f   : > { %v2865_v47 = vpop.f32.mrf.mxu0 }
 0x410   : > { %v2950_v43 = vand.u32 4294901760, %v2949_v17  ;;  %v2866_v19 = vadd.f32 %v2865_v47, %v2825_v1  ;;  %2924 = vmatpush.msrb.mxu2 %v2923_v34  ;;  %v2900_v31 = vpop.f32.mrf.mxu1 }
 0x411   : > { %2930 = vmatmul.f32.vlgmr.msrb.gmra.mxu2 %v3732_v26 }
 0x412   : > { %2981 = vmatpush.msra.mxu2 %v2949_v17  ;;  %v2951_v35 = vsub.f32 %v2949_v17, %v2950_v43  ;;  %v2901_v24 = vadd.f32 %v2900_v31, %v2866_v19  ;;  %v3237_v19 = vmul.f32 2.0, %v3229_v46  ;;  %v3230_v31 = vmul.f32 %v4100_v10, %v4097_v15 }
 0x413   : > { %v2830_v14 = vpop.f32.mrf.mxu3 }
 0x414   : > { %2984 = vmatpush.msra.mxu2 %v2955_v48  ;;  %v2952_v52 = vand.u32 4294901760, %v2951_v35  ;;  %v3082_v29 = vand.u32 4294901760, %v2901_v24  ;;  %v2831_v44 = vadd.f32 %v2830_v14, %v2788_v22  ;;  %v3238_v25 = vmul.f32 2.0, %v3230_v31 }
 0x416   : > { %3033 = vmatpush.msrb.mxu2 %v2950_v43  ;;  %2953 = vmatpush.msrb.mxu3 %v2952_v52  ;;  %v3114_v4 = vsub.f32 %v2901_v24, %v3082_v29 }
 0x417   : > { %v2869_v28 = vpop.f32.mrf.mxu0 }
 0x418   : > { %3037 = vmatpush.msrb.mxu2 %v2956_v53  ;;  %v2870_v11 = vadd.f32 %v2869_v28, %v2831_v44  ;;  %2959 = vmatpush.msrb.mxu3 %v2958_v56  ;;  %v2904_v3 = vpop.f32.mrf.mxu1  ;;  %v3115_v8 = vand.u32 4294901760, %v3114_v4 }
 0x419   : > { %2961 = vmatmul.f32.vlgmr.msrb.gmra.mxu3 %v3721_v55  ;;  %2987 = vmatmul.f32.vlgmr.msra.gmra.mxu2 %v3725_v62 }
 0x41a   : > { %v2905_v30 = vadd.f32 %v2904_v3, %v2870_v11  ;;  %3006 = vmatpush.msra.mxu3 %v2921_v60  ;;  %v3116_v18 = vsub.f32 %v3114_v4, %v3115_v8 }
 0x41c   : > { %v3080_v36 = vand.u32 4294901760, %v2905_v30  ;;  %3008 = vmatpush.msra.mxu3 %v2923_v34  ;;  %v3117_v23 = vand.u32 4294901760, %v3116_v18 }
 0x41e   : > { %3058 = vmatpush.msrb.mxu3 %v2921_v60  ;;  %v3108_v59 = vsub.f32 %v2905_v30, %v3080_v36  ;;  %3081 = vmatpush.msra.mxu2 %v3080_v36 }
 0x41f   : > { %3165 = vmatpush.msra.mxu1 %v3080_v36 }
 0x420   : > { %3060 = vmatpush.msrb.mxu3 %v2923_v34  ;;  %v3109_v58 = vand.u32 4294901760, %v3108_v59  ;;  %3083 = vmatpush.msra.mxu2 %v3082_v29  ;;  %v3250_v34 = vadd.f32 %v4108_v7, %v4104_v20 }
 0x421   : > { %3140 = vmatpush.msra.mxu0 %v3108_v59  ;;  %3167 = vmatpush.msra.mxu1 %v3082_v29 }
 0x422   : > { %3012 = vmatmul.f32.vlgmr.msra.gmra.mxu3 %v3728_v5  ;;  %v3110_v16 = vsub.f32 %v3108_v59, %v3109_v58  ;;  %3039 = vmatmul.f32.vlgmr.msrb.gmra.mxu2 %v3721_v55 }
 0x423   : > { %3143 = vmatpush.msra.mxu0 %v3114_v4  ;;  %3192 = vmatpush.msrb.mxu2 %v3109_v58 }
 0x424   : > { %3146 = vmatmul.f32.vlgmr.msra.gmra.mxu0 %v3725_v62  ;;  %v3111_v51 = vand.u32 4294901760, %v3110_v16  ;;  %3171 = vmatmul.f32.vlgmr.msra.gmra.mxu1 %v3728_v5 }
 0x425   : > { %3196 = vmatpush.msrb.mxu2 %v3115_v8 }
 0x426   : > { %3112 = vmatpush.msra.mxu3 %v3111_v51 }
 0x428   : > { %3118 = vmatpush.msra.mxu3 %v3117_v23 }
 0x42a   : > { %3062 = vmatmul.f32.vlgmr.msrb.gmra.mxu3 %v3721_v55  ;;  %3089 = vmatmul.f32.vlgmr.msra.gmra.mxu2 %v3732_v26  ;;  %v3239_v26 = vstv %s286_s6 }
 0x42b   : > { %3217 = vmatpush.msrb.mxu3 %v3080_v36  ;;  %v3251_v45 = vadd.f32 %v3249_v61, %v3239_v26  ;;  %v3252_v50 = vadd.f32 %v3250_v34, %v3239_v26  ;;  %v3240_v22 = vadd.f32 %v3239_v26, %v3237_v19  ;;  %v3241_v11 = vadd.f32 %v3239_v26, %v3238_v25 }
 0x42d   : > { %3219 = vmatpush.msrb.mxu3 %v3082_v29  ;;  %v3257_v54 = vmul.f32 %v3255_v13, %v3251_v45  ;;  %v3258_v37 = vmul.f32 %v3256_v38, %v3252_v50 }
 0x42f   : > { %3448 = vrcp.f32 %v3257_v54 }
 0x430   : > { %3450 = vrcp.f32 %v3258_v37 }
 0x432   : > { %3120 = vmatmul.f32.vlgmr.msra.gmra.mxu3 %v3721_v55  ;;  %3198 = vmatmul.f32.vlgmr.msrb.gmra.mxu2 %v3721_v55 }
 0x435   : > { %v3449_v1 = vpop.eup %3448 }
 0x436   : > { %v3451_v43 = vpop.eup %3450  ;;  %v3261_v21 = vmul.f32 %v3449_v1, %v3257_v54 }
 0x437   : > { %v3262_v24 = vmul.f32 %v3451_v43, %v3258_v37 }
 0x438   : > { %v3263_v52 = vsub.f32 2.0, %v3261_v21 }
 0x439   : > { %v3264_v56 = vsub.f32 2.0, %v3262_v24 }
 0x43a   : > { %3221 = vmatmul.f32.vlgmr.msrb.gmra.mxu3 %v3721_v55  ;;  %v3265_v3 = vmul.f32 %v3449_v1, %v3263_v52 }
 0x43b   : > { %v3266_v30 = vmul.f32 %v3451_v43, %v3264_v56 }
 0x494   : > { %v2931_v62 = vpop.f32.mrf.mxu2 }
 0x49c   : > { %v2962_v2 = vpop.f32.mrf.mxu3  ;;  %v2988_v27 = vpop.f32.mrf.mxu2 }
 0x49d   : > { %v2963_v12 = vadd.f32 %v2962_v2, %v2931_v62 }
 0x49f   : > { %v2989_v32 = vadd.f32 %v2988_v27, %v2963_v12 }
 0x4a1   : > { %v3147_v20 = vpop.f32.mrf.mxu0  ;;  %v3172_v60 = vpop.f32.mrf.mxu1 }
 0x4a5   : > { %v3013_v5 = vpop.f32.mrf.mxu3  ;;  %v3040_v40 = vpop.f32.mrf.mxu2 }
 0x4a6   : > { %v3014_v55 = vadd.f32 %v3013_v5, %v2989_v32 }
 0x4a8   : > { %v3041_v42 = vadd.f32 %v3040_v40, %v3014_v55 }
 0x4ad   : > { %v3063_v0 = vpop.f32.mrf.mxu3  ;;  %v3090_v48 = vpop.f32.mrf.mxu2 }
 0x4ae   : > { %v3064_v57 = vadd.f32 %v3063_v0, %v3041_v42 }
 0x4b0   : > { %v3235_v7 = vsub.f32 %v3064_v57, %v3229_v46 }
 0x4b2   : > { %v3242_v53 = vmul.f32 2.0, %v3235_v7 }
 0x4b4   : > { %v3245_v33 = vadd.f32 %v3244_v41, %v3242_v53 }
 0x4b5   : > { %v3121_v49 = vpop.f32.mrf.mxu3  ;;  %v3199_v6 = vpop.f32.mrf.mxu2 }
 0x4b6   : > { %v3122_v9 = vadd.f32 %v3121_v49, %v3090_v48  ;;  %v3247_v44 = vmul.f32 %v3245_v33, %v3240_v22 }
 0x4b8   : > { %v3148_v17 = vadd.f32 %v3147_v20, %v3122_v9  ;;  %v3267_v15 = vmul.f32 %v3265_v3, %v3247_v44 }
 0x4ba   : > { %v3173_v47 = vadd.f32 %v3172_v60, %v3148_v17  ;;  %v3270_v36 = vsel %vm3269_vm1, %v3267_v15, 0.0 }
 0x4bc   : > { %v3200_v39 = vadd.f32 %v3199_v6, %v3173_v47 }
 0x4bd   : > { %v3222_v35 = vpop.f32.mrf.mxu3 }
 0x4be   : > { %v3223_v63 = vadd.f32 %v3222_v35, %v3200_v39 }
 0x4c0   : > { %v3236_v14 = vsub.f32 %v3223_v63, %v3230_v31 }
 0x4c2   : > { %v3243_v29 = vmul.f32 2.0, %v3236_v14 }
 0x4c4   : > { %v3246_v28 = vadd.f32 %v3244_v41, %v3243_v29 }
 0x4c6   : > { %v3248_v4 = vmul.f32 %v3246_v28, %v3241_v11 }
 0x4c8   : > { %v3268_v10 = vmul.f32 %v3266_v30, %v3248_v4 }
 0x4ca   : > { %v3271_v59 = vsel %vm3269_vm1, %v3268_v10, 0.0 }
 0x4cb   : > { %v3272_v8 = vadd.f32 %v3271_v59, %v3270_v36 }
 0x4cd   : > { %3273 = vadd.xlane.f32.xlu0 %v3272_v8 }
 0x540   : > { %v3274_v58 = vpop.xlane.xlu0 %3273 }
 0x541   : > { %v3275_v16 = vrot.slane %v3274_v58, 4 }
 0x543   : > { %v3276_v18 = vadd.f32 %v3275_v16, %v3274_v58 }
 0x545   : > { %v3277_v51 = vrot.slane %v3276_v18, 2 }
 0x547   : > { %v3278_v23 = vadd.f32 %v3277_v51, %v3276_v18 }
 0x549   : > { %v3279_v62 = vrot.slane %v3278_v23, 1 }
 0x54b   : > { %v3280_v2 = vadd.f32 %v3279_v62, %v3278_v23 }
 0x54d   : > { %3394 = vpush %v3280_v2 }
 0x57e   : > { %s3395_s12 = spop %3394 }
 0x57f   : > { %v3282_v27 = vstv %s3395_s12 }
 0x580   : > { %3283 = vst [vmem:[%s285_s11] sm:$0xff] %v3282_v27 }
 0x581 PF: > { %p16_p9 = scmp.ge.s32.totalorder %s3596_s23, 6   ;;  %s4174_s18 = smov %s3535_s19 }
 0x582   : > { %s4175_s19 = smov %s3539_s20  ;;  %s4176_s20 = smov %s3604_s26 }
 0x583   : > { %s4177_s21 = smov %s3596_s23  ;;  %18 = sbr.rel (!%p16_p9) target bundleno = 4 (0x4), region = 88 }
 0x588   :  { %3303 = vsyncpa [#allocation3], 1 }
 0x589   :  { %3305 = vsyncpa [#allocation3 + $0x1], 1 }
 0x58a   :  { %3306 = vsyncpa [#allocation4], 1 }
 0x58b   :  { %3308 = vsyncpa [#allocation4 + $0x1], 1 }

</bundles_post_ra>
